<compile_context>
chip_gen: v7x
topology: tpu7x:2x2x1
jax: 0.10.0
libtpu: 0.0.40
codegen_flags: <defaults>
</compile_context>

<pallas_src>
import functools

import numpy as np
import jax
import jax.numpy as jnp
from jax.experimental import pallas as pl
from jax.experimental.pallas import tpu as pltpu

EPS = 1e-5  # PyTorch InstanceNorm2d default (affine=False, biased variance)


def _instance_norm(a):
    """One-pass InstanceNorm over the spatial (lane) axis. a: (C, H*W) f32."""
    inv_n = 1.0 / a.shape[1]
    mean = jnp.sum(a, axis=1, keepdims=True) * inv_n
    ex2 = jnp.sum(a * a, axis=1, keepdims=True) * inv_n
    var = jnp.maximum(ex2 - mean * mean, 0.0)   # clamp: E[x^2] - mean^2 >= 0
    return (a - mean) * jax.lax.rsqrt(var + EPS)


def residual_block_kernel(x_ref, m_ref, w1_ref, b1_ref, w2_ref, b2_ref,
                          out_ref, xpad_ref, col_ref, *, H, W, C, S):
    HW = H * W
    x = x_ref[0]                                           # (C, HW) f32

    # Zero the flat-padding strips (done every grid step: cheap, and keeps the
    # kernel correct when the "parallel" batch axis is sharded across cores).
    xpad_ref[:, 0:S] = jnp.zeros((C, S), jnp.float32)
    xpad_ref[:, S + HW:2 * S + HW] = jnp.zeros((C, S), jnp.float32)

    def conv3x3(src, w_ref, b_ref, pad, dil, mask_base):
        """3x3 conv of src (C, HW) as one MXU matmul with K = 9*C."""
        xpad_ref[:, S:S + HW] = src
        for ky in range(3):
            for kx in range(3):
                t = ky * 3 + kx
                oy = ky * dil - pad
                ox = kx * dil - pad
                s = oy * W + ox                            # flat tap shift
                tap = xpad_ref[:, S + s:S + s + HW]        # (C, HW) static slice
                keep = m_ref[mask_base + t:mask_base + t + 1, :] != 0
                col_ref[t * C:(t + 1) * C, :] = jnp.where(keep, tap, 0.0)
        rhs = col_ref[...].astype(jnp.bfloat16)            # (9*C, HW)
        return jnp.dot(w_ref[...], rhs,
                       preferred_element_type=jnp.float32) + b_ref[...]

    # ---- conv1: 3x3, dilation=2, padding=2 ----
    o1 = conv3x3(x, w1_ref, b1_ref, pad=2, dil=2, mask_base=0)
    # ---- InstanceNorm2d + ReLU (f32) ----
    y = jnp.maximum(_instance_norm(o1), 0.0)
    # ---- conv2: 3x3, padding=1 (col_ref fully overwritten; Cin == Cout) ----
    o2 = conv3x3(y, w2_ref, b2_ref, pad=1, dil=1, mask_base=9)
    # ---- InstanceNorm2d + residual ----
    out_ref[0] = (_instance_norm(o2) + x).astype(out_ref.dtype)


def _tap_masks(H, W, pad, dil):
    """(9, H*W) int32 validity masks for the 3x3 taps (ky-major, kx-minor)."""
    h = np.arange(H)[:, None]
    w = np.arange(W)[None, :]
    rows = []
    for ky in range(3):
        for kx in range(3):
            oy = ky * dil - pad
            ox = kx * dil - pad
            valid = ((h + oy >= 0) & (h + oy < H)
                     & (w + ox >= 0) & (w + ox < W))
            rows.append(valid.reshape(-1))
    return np.stack(rows).astype(np.int32)


@jax.jit
def residual_block(x_nchw, w1, b1, w2, b2):
    """x_nchw: (N, Cin, H, W); w1: (Cout, Cin, 3, 3); w2: (Cout, Cout, 3, 3)."""
    N, Cin, H, W = x_nchw.shape
    Cout = w1.shape[0]
    assert Cin == Cout, "residual add requires in_channels == out_channels"
    HW = H * W
    S = 2 * W + 2   # max |flat tap shift| (conv1: pad=dil=2); covers conv2 too

    # NCHW -> (N, C, H*W): pure reshape, no transpose.
    x_flat = x_nchw.reshape(N, Cin, HW).astype(jnp.float32)
    # OIHW -> (Cout, ky, kx, Cin) -> (Cout, 9*Cin): rows match the im2col
    # column order (tap-major, channel-minor); bf16 for the MXU.
    w1k = jnp.transpose(w1, (0, 2, 3, 1)).reshape(Cout, 9 * Cin).astype(jnp.bfloat16)
    w2k = jnp.transpose(w2, (0, 2, 3, 1)).reshape(Cout, 9 * Cout).astype(jnp.bfloat16)
    b1k = b1.reshape(Cout, 1).astype(jnp.float32)
    b2k = b2.reshape(Cout, 1).astype(jnp.float32)
    masks = jnp.asarray(np.concatenate([_tap_masks(H, W, 2, 2),
                                        _tap_masks(H, W, 1, 1)], axis=0))  # (18, HW)

    kernel = functools.partial(residual_block_kernel, H=H, W=W, C=Cin, S=S)

    # VMEM budget: double-buffered x/out blocks + masks + weights + scratch,
    # with headroom; clamped to [16 MiB, 64 MiB] so it is valid on v5e/v6e/v7x.
    blk_bytes = (2 * (Cin * HW * 4)                       # x block (double buf)
                 + 2 * (Cout * HW * 4)                    # out block (double buf)
                 + 2 * (18 * HW * 4)                      # boundary masks
                 + 2 * ((9 * Cin * Cout + 9 * Cout * Cout) * 2 + 2 * Cout * 4)
                 + (Cin * (HW + 2 * S) + 9 * Cin * HW) * 4)   # scratch
    vmem_limit = int(min(64 << 20, max(16 << 20, 2 * blk_bytes)))

    out_flat = pl.pallas_call(
        kernel,
        out_shape=jax.ShapeDtypeStruct((N, Cout, HW), jnp.float32),
        grid_spec=pltpu.PrefetchScalarGridSpec(
            num_scalar_prefetch=0,
            grid=(N,),
            in_specs=[
                pl.BlockSpec((1, Cin, HW), lambda n: (n, 0, 0)),
                pl.BlockSpec((18, HW), lambda n: (0, 0)),
                pl.BlockSpec((Cout, 9 * Cin), lambda n: (0, 0)),
                pl.BlockSpec((Cout, 1), lambda n: (0, 0)),
                pl.BlockSpec((Cout, 9 * Cout), lambda n: (0, 0)),
                pl.BlockSpec((Cout, 1), lambda n: (0, 0)),
            ],
            out_specs=pl.BlockSpec((1, Cout, HW), lambda n: (n, 0, 0)),
            scratch_shapes=[
                pltpu.VMEM((Cin, HW + 2 * S), jnp.float32),   # flat-padded source
                pltpu.VMEM((9 * Cin, HW), jnp.float32),       # im2col columns
            ],
        ),
        compiler_params=pltpu.CompilerParams(
            dimension_semantics=("parallel",),
            vmem_limit_bytes=vmem_limit,
        ),
    )(x_flat, masks, w1k, b1k, w2k, b2k)

    return out_flat.reshape(N, Cout, H, W)


def residual_block_ref(x, w1, b1, w2, b2):
    """Pure-JAX reference (NCHW), mirrors the PyTorch module exactly (f32)."""
    dn = ("NCHW", "OIHW", "NCHW")

    def inorm(o):
        mean = o.mean(axis=(2, 3), keepdims=True)
        var = ((o - mean) ** 2).mean(axis=(2, 3), keepdims=True)
        return (o - mean) / jnp.sqrt(var + EPS)

    o = jax.lax.conv_general_dilated(x, w1, (1, 1), ((2, 2), (2, 2)),
                                     rhs_dilation=(2, 2),
                                     dimension_numbers=dn) + b1[None, :, None, None]
    o = jnp.maximum(inorm(o), 0.0)
    o = jax.lax.conv_general_dilated(o, w2, (1, 1), ((1, 1), (1, 1)),
                                     dimension_numbers=dn) + b2[None, :, None, None]
    o = inorm(o)
    return o + x


if __name__ == "__main__":
    N, C, H, W = 2, 4, 16, 16  # in_channels == out_channels == 4

    key = jax.random.PRNGKey(0)
    kx, kw1, kb1, kw2, kb2 = jax.random.split(key, 5)
    x = jax.random.normal(kx, (N, C, H, W), jnp.float32)
    w1 = jax.random.normal(kw1, (C, C, 3, 3), jnp.float32) * 0.1
    b1 = jax.random.normal(kb1, (C,), jnp.float32) * 0.1
    w2 = jax.random.normal(kw2, (C, C, 3, 3), jnp.float32) * 0.1
    b2 = jax.random.normal(kb2, (C,), jnp.float32) * 0.1

    out = residual_block(x, w1, b1, w2, b2)
    out = jax.block_until_ready(out)

    ref = residual_block_ref(x, w1, b1, w2, b2)
    assert out.shape == (N, C, H, W)
    # bf16 MXU operands with f32 accumulation -> relaxed tolerance vs f32 ref.
    err = float(jnp.max(jnp.abs(out - ref)))
    assert err < 5e-2, err

    print("KERNEL_OK")
</pallas_src>

<mosaic_0001>
module attributes {stable_mosaic.version = 11 : i64} {
  func.func @residual_block_kernel(%arg0: i32, %arg1: memref<1x4x256xf32, #tpu.memory_space<vmem>>, %arg2: memref<18x256xi32, #tpu.memory_space<vmem>>, %arg3: memref<4x36xbf16, #tpu.memory_space<vmem>>, %arg4: memref<4x1xf32, #tpu.memory_space<vmem>>, %arg5: memref<4x36xbf16, #tpu.memory_space<vmem>>, %arg6: memref<4x1xf32, #tpu.memory_space<vmem>>, %arg7: memref<1x4x256xf32, #tpu.memory_space<vmem>>, %arg8: memref<4x324xf32, #tpu.memory_space<vmem>>, %arg9: memref<36x256xf32, #tpu.memory_space<vmem>>) attributes {dimension_semantics = [#tpu.dimension_semantics<parallel>], iteration_bounds = array<i64: 2>, scalar_prefetch = 0 : i64, scratch_operands = 2 : i64, tpu.core_type = #tpu.core_type<tc>, window_params = [{transform_indices = @transform_0, window_bounds = array<i64: 1, 4, 256>}, {pipeline_mode = #tpu.pipeline_mode<synchronous>, transform_indices = @transform_1, window_bounds = array<i64: 18, 256>}, {pipeline_mode = #tpu.pipeline_mode<synchronous>, transform_indices = @transform_2, window_bounds = array<i64: 4, 36>}, {pipeline_mode = #tpu.pipeline_mode<synchronous>, transform_indices = @transform_3, window_bounds = array<i64: 4, 1>}, {pipeline_mode = #tpu.pipeline_mode<synchronous>, transform_indices = @transform_4, window_bounds = array<i64: 4, 36>}, {pipeline_mode = #tpu.pipeline_mode<synchronous>, transform_indices = @transform_5, window_bounds = array<i64: 4, 1>}, {transform_indices = @transform_6, window_bounds = array<i64: 1, 4, 256>}]} {
    %c0 = arith.constant 0 : index
    %c0_0 = arith.constant 0 : index
    %c0_1 = arith.constant 0 : index
    %0 = vector.load %arg1[%c0, %c0_0, %c0_1] : memref<1x4x256xf32, #tpu.memory_space<vmem>>, vector<1x4x256xf32>
    %1 = vector.shape_cast %0 : vector<1x4x256xf32> to vector<4x256xf32>
    %cst = arith.constant 0.000000e+00 : f32
    %2 = vector.broadcast %cst : f32 to vector<4x34xf32>
    %c0_2 = arith.constant 0 : index
    %c0_3 = arith.constant 0 : index
    %3 = vector.load %arg8[%c0_2, %c0_3] : memref<4x324xf32, #tpu.memory_space<vmem>>, vector<4x34xf32>
    tpu.vector_store %arg8[%c0_2, %c0_3], %2 {strides = array<i32>} : memref<4x324xf32, #tpu.memory_space<vmem>>, vector<4x34xf32>,
    %cst_4 = arith.constant 0.000000e+00 : f32
    %4 = vector.broadcast %cst_4 : f32 to vector<4x34xf32>
    %c0_5 = arith.constant 0 : index
    %c290 = arith.constant 290 : index
    %5 = vector.load %arg8[%c0_5, %c290] : memref<4x324xf32, #tpu.memory_space<vmem>>, vector<4x34xf32>
    tpu.vector_store %arg8[%c0_5, %c290], %4 {strides = array<i32>} : memref<4x324xf32, #tpu.memory_space<vmem>>, vector<4x34xf32>,
    %c0_6 = arith.constant 0 : index
    %c34 = arith.constant 34 : index
    %6 = vector.load %arg8[%c0_6, %c34] : memref<4x324xf32, #tpu.memory_space<vmem>>, vector<4x256xf32>
    tpu.vector_store %arg8[%c0_6, %c34], %1 {strides = array<i32>} : memref<4x324xf32, #tpu.memory_space<vmem>>, vector<4x256xf32>,
    %c0_7 = arith.constant 0 : index
    %c0_8 = arith.constant 0 : index
    %7 = vector.load %arg8[%c0_7, %c0_8] : memref<4x324xf32, #tpu.memory_space<vmem>>, vector<4x256xf32>
    %c0_9 = arith.constant 0 : index
    %c0_10 = arith.constant 0 : index
    %8 = vector.load %arg2[%c0_9, %c0_10] : memref<18x256xi32, #tpu.memory_space<vmem>>, vector<1x256xi32>
    %c0_i32 = arith.constant 0 : i32
    %9 = vector.broadcast %c0_i32 : i32 to vector<1x256xi32>
    %10 = arith.cmpi ne, %8, %9 : vector<1x256xi32>
    %cst_11 = arith.constant 0.000000e+00 : f32
    %11 = vector.shape_cast %10 : vector<1x256xi1> to vector<1x256xi1>
    %12 = vector.broadcast %11 : vector<1x256xi1> to vector<4x256xi1>
    %13 = vector.broadcast %cst_11 : f32 to vector<4x256xf32>
    %14 = arith.select %12, %7, %13 : vector<4x256xi1>, vector<4x256xf32>
    %c0_12 = arith.constant 0 : index
    %c0_13 = arith.constant 0 : index
    %15 = vector.load %arg9[%c0_12, %c0_13] : memref<36x256xf32, #tpu.memory_space<vmem>>, vector<4x256xf32>
    tpu.vector_store %arg9[%c0_12, %c0_13], %14 {strides = array<i32>} : memref<36x256xf32, #tpu.memory_space<vmem>>, vector<4x256xf32>,
    %c0_14 = arith.constant 0 : index
    %c2 = arith.constant 2 : index
    %16 = vector.load %arg8[%c0_14, %c2] : memref<4x324xf32, #tpu.memory_space<vmem>>, vector<4x256xf32>
    %c1 = arith.constant 1 : index
    %c0_15 = arith.constant 0 : index
    %17 = vector.load %arg2[%c1, %c0_15] : memref<18x256xi32, #tpu.memory_space<vmem>>, vector<1x256xi32>
    %c0_i32_16 = arith.constant 0 : i32
    %18 = vector.broadcast %c0_i32_16 : i32 to vector<1x256xi32>
    %19 = arith.cmpi ne, %17, %18 : vector<1x256xi32>
    %cst_17 = arith.constant 0.000000e+00 : f32
    %20 = vector.shape_cast %19 : vector<1x256xi1> to vector<1x256xi1>
    %21 = vector.broadcast %20 : vector<1x256xi1> to vector<4x256xi1>
    %22 = vector.broadcast %cst_17 : f32 to vector<4x256xf32>
    %23 = arith.select %21, %16, %22 : vector<4x256xi1>, vector<4x256xf32>
    %c4 = arith.constant 4 : index
    %c0_18 = arith.constant 0 : index
    %24 = vector.load %arg9[%c4, %c0_18] : memref<36x256xf32, #tpu.memory_space<vmem>>, vector<4x256xf32>
    tpu.vector_store %arg9[%c4, %c0_18], %23 {strides = array<i32>} : memref<36x256xf32, #tpu.memory_space<vmem>>, vector<4x256xf32>,
    %c0_19 = arith.constant 0 : index
    %c4_20 = arith.constant 4 : index
    %25 = vector.load %arg8[%c0_19, %c4_20] : memref<4x324xf32, #tpu.memory_space<vmem>>, vector<4x256xf32>
    %c2_21 = arith.constant 2 : index
    %c0_22 = arith.constant 0 : index
    %26 = vector.load %arg2[%c2_21, %c0_22] : memref<18x256xi32, #tpu.memory_space<vmem>>, vector<1x256xi32>
    %c0_i32_23 = arith.constant 0 : i32
    %27 = vector.broadcast %c0_i32_23 : i32 to vector<1x256xi32>
    %28 = arith.cmpi ne, %26, %27 : vector<1x256xi32>
    %cst_24 = arith.constant 0.000000e+00 : f32
    %29 = vector.shape_cast %28 : vector<1x256xi1> to vector<1x256xi1>
    %30 = vector.broadcast %29 : vector<1x256xi1> to vector<4x256xi1>
    %31 = vector.broadcast %cst_24 : f32 to vector<4x256xf32>
    %32 = arith.select %30, %25, %31 : vector<4x256xi1>, vector<4x256xf32>
    %c8 = arith.constant 8 : index
    %c0_25 = arith.constant 0 : index
    %33 = vector.load %arg9[%c8, %c0_25] : memref<36x256xf32, #tpu.memory_space<vmem>>, vector<4x256xf32>
    tpu.vector_store %arg9[%c8, %c0_25], %32 {strides = array<i32>} : memref<36x256xf32, #tpu.memory_space<vmem>>, vector<4x256xf32>,
    %c0_26 = arith.constant 0 : index
    %c32 = arith.constant 32 : index
    %34 = vector.load %arg8[%c0_26, %c32] : memref<4x324xf32, #tpu.memory_space<vmem>>, vector<4x256xf32>
    %c3 = arith.constant 3 : index
    %c0_27 = arith.constant 0 : index
    %35 = vector.load %arg2[%c3, %c0_27] : memref<18x256xi32, #tpu.memory_space<vmem>>, vector<1x256xi32>
    %c0_i32_28 = arith.constant 0 : i32
    %36 = vector.broadcast %c0_i32_28 : i32 to vector<1x256xi32>
    %37 = arith.cmpi ne, %35, %36 : vector<1x256xi32>
    %cst_29 = arith.constant 0.000000e+00 : f32
    %38 = vector.shape_cast %37 : vector<1x256xi1> to vector<1x256xi1>
    %39 = vector.broadcast %38 : vector<1x256xi1> to vector<4x256xi1>
    %40 = vector.broadcast %cst_29 : f32 to vector<4x256xf32>
    %41 = arith.select %39, %34, %40 : vector<4x256xi1>, vector<4x256xf32>
    %c12 = arith.constant 12 : index
    %c0_30 = arith.constant 0 : index
    %42 = vector.load %arg9[%c12, %c0_30] : memref<36x256xf32, #tpu.memory_space<vmem>>, vector<4x256xf32>
    tpu.vector_store %arg9[%c12, %c0_30], %41 {strides = array<i32>} : memref<36x256xf32, #tpu.memory_space<vmem>>, vector<4x256xf32>,
    %c0_31 = arith.constant 0 : index
    %c34_32 = arith.constant 34 : index
    %43 = vector.load %arg8[%c0_31, %c34_32] : memref<4x324xf32, #tpu.memory_space<vmem>>, vector<4x256xf32>
    %c4_33 = arith.constant 4 : index
    %c0_34 = arith.constant 0 : index
    %44 = vector.load %arg2[%c4_33, %c0_34] : memref<18x256xi32, #tpu.memory_space<vmem>>, vector<1x256xi32>
    %c0_i32_35 = arith.constant 0 : i32
    %45 = vector.broadcast %c0_i32_35 : i32 to vector<1x256xi32>
    %46 = arith.cmpi ne, %44, %45 : vector<1x256xi32>
    %cst_36 = arith.constant 0.000000e+00 : f32
    %47 = vector.shape_cast %46 : vector<1x256xi1> to vector<1x256xi1>
    %48 = vector.broadcast %47 : vector<1x256xi1> to vector<4x256xi1>
    %49 = vector.broadcast %cst_36 : f32 to vector<4x256xf32>
    %50 = arith.select %48, %43, %49 : vector<4x256xi1>, vector<4x256xf32>
    %c16 = arith.constant 16 : index
    %c0_37 = arith.constant 0 : index
    %51 = vector.load %arg9[%c16, %c0_37] : memref<36x256xf32, #tpu.memory_space<vmem>>, vector<4x256xf32>
    tpu.vector_store %arg9[%c16, %c0_37], %50 {strides = array<i32>} : memref<36x256xf32, #tpu.memory_space<vmem>>, vector<4x256xf32>,
    %c0_38 = arith.constant 0 : index
    %c36 = arith.constant 36 : index
    %52 = vector.load %arg8[%c0_38, %c36] : memref<4x324xf32, #tpu.memory_space<vmem>>, vector<4x256xf32>
    %c5 = arith.constant 5 : index
    %c0_39 = arith.constant 0 : index
    %53 = vector.load %arg2[%c5, %c0_39] : memref<18x256xi32, #tpu.memory_space<vmem>>, vector<1x256xi32>
    %c0_i32_40 = arith.constant 0 : i32
    %54 = vector.broadcast %c0_i32_40 : i32 to vector<1x256xi32>
    %55 = arith.cmpi ne, %53, %54 : vector<1x256xi32>
    %cst_41 = arith.constant 0.000000e+00 : f32
    %56 = vector.shape_cast %55 : vector<1x256xi1> to vector<1x256xi1>
    %57 = vector.broadcast %56 : vector<1x256xi1> to vector<4x256xi1>
    %58 = vector.broadcast %cst_41 : f32 to vector<4x256xf32>
    %59 = arith.select %57, %52, %58 : vector<4x256xi1>, vector<4x256xf32>
    %c20 = arith.constant 20 : index
    %c0_42 = arith.constant 0 : index
    %60 = vector.load %arg9[%c20, %c0_42] : memref<36x256xf32, #tpu.memory_space<vmem>>, vector<4x256xf32>
    tpu.vector_store %arg9[%c20, %c0_42], %59 {strides = array<i32>} : memref<36x256xf32, #tpu.memory_space<vmem>>, vector<4x256xf32>,
    %c0_43 = arith.constant 0 : index
    %c64 = arith.constant 64 : index
    %61 = vector.load %arg8[%c0_43, %c64] : memref<4x324xf32, #tpu.memory_space<vmem>>, vector<4x256xf32>
    %c6 = arith.constant 6 : index
    %c0_44 = arith.constant 0 : index
    %62 = vector.load %arg2[%c6, %c0_44] : memref<18x256xi32, #tpu.memory_space<vmem>>, vector<1x256xi32>
    %c0_i32_45 = arith.constant 0 : i32
    %63 = vector.broadcast %c0_i32_45 : i32 to vector<1x256xi32>
    %64 = arith.cmpi ne, %62, %63 : vector<1x256xi32>
    %cst_46 = arith.constant 0.000000e+00 : f32
    %65 = vector.shape_cast %64 : vector<1x256xi1> to vector<1x256xi1>
    %66 = vector.broadcast %65 : vector<1x256xi1> to vector<4x256xi1>
    %67 = vector.broadcast %cst_46 : f32 to vector<4x256xf32>
    %68 = arith.select %66, %61, %67 : vector<4x256xi1>, vector<4x256xf32>
    %c24 = arith.constant 24 : index
    %c0_47 = arith.constant 0 : index
    %69 = vector.load %arg9[%c24, %c0_47] : memref<36x256xf32, #tpu.memory_space<vmem>>, vector<4x256xf32>
    tpu.vector_store %arg9[%c24, %c0_47], %68 {strides = array<i32>} : memref<36x256xf32, #tpu.memory_space<vmem>>, vector<4x256xf32>,
    %c0_48 = arith.constant 0 : index
    %c66 = arith.constant 66 : index
    %70 = vector.load %arg8[%c0_48, %c66] : memref<4x324xf32, #tpu.memory_space<vmem>>, vector<4x256xf32>
    %c7 = arith.constant 7 : index
    %c0_49 = arith.constant 0 : index
    %71 = vector.load %arg2[%c7, %c0_49] : memref<18x256xi32, #tpu.memory_space<vmem>>, vector<1x256xi32>
    %c0_i32_50 = arith.constant 0 : i32
    %72 = vector.broadcast %c0_i32_50 : i32 to vector<1x256xi32>
    %73 = arith.cmpi ne, %71, %72 : vector<1x256xi32>
    %cst_51 = arith.constant 0.000000e+00 : f32
    %74 = vector.shape_cast %73 : vector<1x256xi1> to vector<1x256xi1>
    %75 = vector.broadcast %74 : vector<1x256xi1> to vector<4x256xi1>
    %76 = vector.broadcast %cst_51 : f32 to vector<4x256xf32>
    %77 = arith.select %75, %70, %76 : vector<4x256xi1>, vector<4x256xf32>
    %c28 = arith.constant 28 : index
    %c0_52 = arith.constant 0 : index
    %78 = vector.load %arg9[%c28, %c0_52] : memref<36x256xf32, #tpu.memory_space<vmem>>, vector<4x256xf32>
    tpu.vector_store %arg9[%c28, %c0_52], %77 {strides = array<i32>} : memref<36x256xf32, #tpu.memory_space<vmem>>, vector<4x256xf32>,
    %c0_53 = arith.constant 0 : index
    %c68 = arith.constant 68 : index
    %79 = vector.load %arg8[%c0_53, %c68] : memref<4x324xf32, #tpu.memory_space<vmem>>, vector<4x256xf32>
    %c8_54 = arith.constant 8 : index
    %c0_55 = arith.constant 0 : index
    %80 = vector.load %arg2[%c8_54, %c0_55] : memref<18x256xi32, #tpu.memory_space<vmem>>, vector<1x256xi32>
    %c0_i32_56 = arith.constant 0 : i32
    %81 = vector.broadcast %c0_i32_56 : i32 to vector<1x256xi32>
    %82 = arith.cmpi ne, %80, %81 : vector<1x256xi32>
    %cst_57 = arith.constant 0.000000e+00 : f32
    %83 = vector.shape_cast %82 : vector<1x256xi1> to vector<1x256xi1>
    %84 = vector.broadcast %83 : vector<1x256xi1> to vector<4x256xi1>
    %85 = vector.broadcast %cst_57 : f32 to vector<4x256xf32>
    %86 = arith.select %84, %79, %85 : vector<4x256xi1>, vector<4x256xf32>
    %c32_58 = arith.constant 32 : index
    %c0_59 = arith.constant 0 : index
    %87 = vector.load %arg9[%c32_58, %c0_59] : memref<36x256xf32, #tpu.memory_space<vmem>>, vector<4x256xf32>
    tpu.vector_store %arg9[%c32_58, %c0_59], %86 {strides = array<i32>} : memref<36x256xf32, #tpu.memory_space<vmem>>, vector<4x256xf32>,
    %c0_60 = arith.constant 0 : index
    %c0_61 = arith.constant 0 : index
    %88 = vector.load %arg9[%c0_60, %c0_61] : memref<36x256xf32, #tpu.memory_space<vmem>>, vector<36x256xf32>
    %89 = arith.truncf %88 : vector<36x256xf32> to vector<36x256xbf16>
    %c0_62 = arith.constant 0 : index
    %c0_63 = arith.constant 0 : index
    %90 = vector.load %arg3[%c0_62, %c0_63] : memref<4x36xbf16, #tpu.memory_space<vmem>>, vector<4x36xbf16>
    %cst_64 = arith.constant dense<0.000000e+00> : vector<4x256xf32>
    %91 = tpu.matmul %90, %89, %cst_64 {dimension_numbers = #tpu.dot_dimension_numbers<[1], [0], [0], [1], [0, 0, 1, 1], [], []>} : vector<4x36xbf16>, vector<36x256xbf16>, vector<4x256xf32> -> vector<4x256xf32>
    %c0_65 = arith.constant 0 : index
    %c0_66 = arith.constant 0 : index
    %92 = vector.load %arg4[%c0_65, %c0_66] : memref<4x1xf32, #tpu.memory_space<vmem>>, vector<4x1xf32>
    %93 = vector.broadcast %92 : vector<4x1xf32> to vector<4x256xf32>
    %94 = arith.addf %91, %93 : vector<4x256xf32>
    %cst_67 = arith.constant dense<0.000000e+00> : vector<4xf32>
    %95 = vector.multi_reduction <add>, %94, %cst_67 [1] : vector<4x256xf32> to vector<4xf32>
    %96 = vector.shape_cast %95 : vector<4xf32> to vector<4x1xf32>
    %cst_68 = arith.constant 3.906250e-03 : f32
    %97 = vector.broadcast %cst_68 : f32 to vector<4x1xf32>
    %98 = arith.mulf %96, %97 : vector<4x1xf32>
    %99 = arith.mulf %94, %94 : vector<4x256xf32>
    %cst_69 = arith.constant dense<0.000000e+00> : vector<4xf32>
    %100 = vector.multi_reduction <add>, %99, %cst_69 [1] : vector<4x256xf32> to vector<4xf32>
    %101 = vector.shape_cast %100 : vector<4xf32> to vector<4x1xf32>
    %cst_70 = arith.constant 3.906250e-03 : f32
    %102 = vector.broadcast %cst_70 : f32 to vector<4x1xf32>
    %103 = arith.mulf %101, %102 : vector<4x1xf32>
    %104 = arith.mulf %98, %98 : vector<4x1xf32>
    %105 = arith.subf %103, %104 : vector<4x1xf32>
    %cst_71 = arith.constant 0.000000e+00 : f32
    %106 = vector.broadcast %cst_71 : f32 to vector<4x1xf32>
    %107 = arith.maximumf %105, %106 : vector<4x1xf32>
    %108 = vector.broadcast %98 : vector<4x1xf32> to vector<4x256xf32>
    %109 = arith.subf %94, %108 : vector<4x256xf32>
    %cst_72 = arith.constant 9.99999974E-6 : f32
    %110 = vector.broadcast %cst_72 : f32 to vector<4x1xf32>
    %111 = arith.addf %107, %110 : vector<4x1xf32>
    %112 = math.rsqrt %111 : vector<4x1xf32>
    %113 = vector.broadcast %112 : vector<4x1xf32> to vector<4x256xf32>
    %114 = arith.mulf %109, %113 : vector<4x256xf32>
    %cst_73 = arith.constant 0.000000e+00 : f32
    %115 = vector.broadcast %cst_73 : f32 to vector<4x256xf32>
    %116 = arith.maximumf %114, %115 : vector<4x256xf32>
    %c0_74 = arith.constant 0 : index
    %c34_75 = arith.constant 34 : index
    %117 = vector.load %arg8[%c0_74, %c34_75] : memref<4x324xf32, #tpu.memory_space<vmem>>, vector<4x256xf32>
    tpu.vector_store %arg8[%c0_74, %c34_75], %116 {strides = array<i32>} : memref<4x324xf32, #tpu.memory_space<vmem>>, vector<4x256xf32>,
    %c0_76 = arith.constant 0 : index
    %c17 = arith.constant 17 : index
    %118 = vector.load %arg8[%c0_76, %c17] : memref<4x324xf32, #tpu.memory_space<vmem>>, vector<4x256xf32>
    %c9 = arith.constant 9 : index
    %c0_77 = arith.constant 0 : index
    %119 = vector.load %arg2[%c9, %c0_77] : memref<18x256xi32, #tpu.memory_space<vmem>>, vector<1x256xi32>
    %c0_i32_78 = arith.constant 0 : i32
    %120 = vector.broadcast %c0_i32_78 : i32 to vector<1x256xi32>
    %121 = arith.cmpi ne, %119, %120 : vector<1x256xi32>
    %cst_79 = arith.constant 0.000000e+00 : f32
    %122 = vector.shape_cast %121 : vector<1x256xi1> to vector<1x256xi1>
    %123 = vector.broadcast %122 : vector<1x256xi1> to vector<4x256xi1>
    %124 = vector.broadcast %cst_79 : f32 to vector<4x256xf32>
    %125 = arith.select %123, %118, %124 : vector<4x256xi1>, vector<4x256xf32>
    %c0_80 = arith.constant 0 : index
    %c0_81 = arith.constant 0 : index
    %126 = vector.load %arg9[%c0_80, %c0_81] : memref<36x256xf32, #tpu.memory_space<vmem>>, vector<4x256xf32>
    tpu.vector_store %arg9[%c0_80, %c0_81], %125 {strides = array<i32>} : memref<36x256xf32, #tpu.memory_space<vmem>>, vector<4x256xf32>,
    %c0_82 = arith.constant 0 : index
    %c18 = arith.constant 18 : index
    %127 = vector.load %arg8[%c0_82, %c18] : memref<4x324xf32, #tpu.memory_space<vmem>>, vector<4x256xf32>
    %c10 = arith.constant 10 : index
    %c0_83 = arith.constant 0 : index
    %128 = vector.load %arg2[%c10, %c0_83] : memref<18x256xi32, #tpu.memory_space<vmem>>, vector<1x256xi32>
    %c0_i32_84 = arith.constant 0 : i32
    %129 = vector.broadcast %c0_i32_84 : i32 to vector<1x256xi32>
    %130 = arith.cmpi ne, %128, %129 : vector<1x256xi32>
    %cst_85 = arith.constant 0.000000e+00 : f32
    %131 = vector.shape_cast %130 : vector<1x256xi1> to vector<1x256xi1>
    %132 = vector.broadcast %131 : vector<1x256xi1> to vector<4x256xi1>
    %133 = vector.broadcast %cst_85 : f32 to vector<4x256xf32>
    %134 = arith.select %132, %127, %133 : vector<4x256xi1>, vector<4x256xf32>
    %c4_86 = arith.constant 4 : index
    %c0_87 = arith.constant 0 : index
    %135 = vector.load %arg9[%c4_86, %c0_87] : memref<36x256xf32, #tpu.memory_space<vmem>>, vector<4x256xf32>
    tpu.vector_store %arg9[%c4_86, %c0_87], %134 {strides = array<i32>} : memref<36x256xf32, #tpu.memory_space<vmem>>, vector<4x256xf32>,
    %c0_88 = arith.constant 0 : index
    %c19 = arith.constant 19 : index
    %136 = vector.load %arg8[%c0_88, %c19] : memref<4x324xf32, #tpu.memory_space<vmem>>, vector<4x256xf32>
    %c11 = arith.constant 11 : index
    %c0_89 = arith.constant 0 : index
    %137 = vector.load %arg2[%c11, %c0_89] : memref<18x256xi32, #tpu.memory_space<vmem>>, vector<1x256xi32>
    %c0_i32_90 = arith.constant 0 : i32
    %138 = vector.broadcast %c0_i32_90 : i32 to vector<1x256xi32>
    %139 = arith.cmpi ne, %137, %138 : vector<1x256xi32>
    %cst_91 = arith.constant 0.000000e+00 : f32
    %140 = vector.shape_cast %139 : vector<1x256xi1> to vector<1x256xi1>
    %141 = vector.broadcast %140 : vector<1x256xi1> to vector<4x256xi1>
    %142 = vector.broadcast %cst_91 : f32 to vector<4x256xf32>
    %143 = arith.select %141, %136, %142 : vector<4x256xi1>, vector<4x256xf32>
    %c8_92 = arith.constant 8 : index
    %c0_93 = arith.constant 0 : index
    %144 = vector.load %arg9[%c8_92, %c0_93] : memref<36x256xf32, #tpu.memory_space<vmem>>, vector<4x256xf32>
    tpu.vector_store %arg9[%c8_92, %c0_93], %143 {strides = array<i32>} : memref<36x256xf32, #tpu.memory_space<vmem>>, vector<4x256xf32>,
    %c0_94 = arith.constant 0 : index
    %c33 = arith.constant 33 : index
    %145 = vector.load %arg8[%c0_94, %c33] : memref<4x324xf32, #tpu.memory_space<vmem>>, vector<4x256xf32>
    %c12_95 = arith.constant 12 : index
    %c0_96 = arith.constant 0 : index
    %146 = vector.load %arg2[%c12_95, %c0_96] : memref<18x256xi32, #tpu.memory_space<vmem>>, vector<1x256xi32>
    %c0_i32_97 = arith.constant 0 : i32
    %147 = vector.broadcast %c0_i32_97 : i32 to vector<1x256xi32>
    %148 = arith.cmpi ne, %146, %147 : vector<1x256xi32>
    %cst_98 = arith.constant 0.000000e+00 : f32
    %149 = vector.shape_cast %148 : vector<1x256xi1> to vector<1x256xi1>
    %150 = vector.broadcast %149 : vector<1x256xi1> to vector<4x256xi1>
    %151 = vector.broadcast %cst_98 : f32 to vector<4x256xf32>
    %152 = arith.select %150, %145, %151 : vector<4x256xi1>, vector<4x256xf32>
    %c12_99 = arith.constant 12 : index
    %c0_100 = arith.constant 0 : index
    %153 = vector.load %arg9[%c12_99, %c0_100] : memref<36x256xf32, #tpu.memory_space<vmem>>, vector<4x256xf32>
    tpu.vector_store %arg9[%c12_99, %c0_100], %152 {strides = array<i32>} : memref<36x256xf32, #tpu.memory_space<vmem>>, vector<4x256xf32>,
    %c0_101 = arith.constant 0 : index
    %c34_102 = arith.constant 34 : index
    %154 = vector.load %arg8[%c0_101, %c34_102] : memref<4x324xf32, #tpu.memory_space<vmem>>, vector<4x256xf32>
    %c13 = arith.constant 13 : index
    %c0_103 = arith.constant 0 : index
    %155 = vector.load %arg2[%c13, %c0_103] : memref<18x256xi32, #tpu.memory_space<vmem>>, vector<1x256xi32>
    %c0_i32_104 = arith.constant 0 : i32
    %156 = vector.broadcast %c0_i32_104 : i32 to vector<1x256xi32>
    %157 = arith.cmpi ne, %155, %156 : vector<1x256xi32>
    %cst_105 = arith.constant 0.000000e+00 : f32
    %158 = vector.shape_cast %157 : vector<1x256xi1> to vector<1x256xi1>
    %159 = vector.broadcast %158 : vector<1x256xi1> to vector<4x256xi1>
    %160 = vector.broadcast %cst_105 : f32 to vector<4x256xf32>
    %161 = arith.select %159, %154, %160 : vector<4x256xi1>, vector<4x256xf32>
    %c16_106 = arith.constant 16 : index
    %c0_107 = arith.constant 0 : index
    %162 = vector.load %arg9[%c16_106, %c0_107] : memref<36x256xf32, #tpu.memory_space<vmem>>, vector<4x256xf32>
    tpu.vector_store %arg9[%c16_106, %c0_107], %161 {strides = array<i32>} : memref<36x256xf32, #tpu.memory_space<vmem>>, vector<4x256xf32>,
    %c0_108 = arith.constant 0 : index
    %c35 = arith.constant 35 : index
    %163 = vector.load %arg8[%c0_108, %c35] : memref<4x324xf32, #tpu.memory_space<vmem>>, vector<4x256xf32>
    %c14 = arith.constant 14 : index
    %c0_109 = arith.constant 0 : index
    %164 = vector.load %arg2[%c14, %c0_109] : memref<18x256xi32, #tpu.memory_space<vmem>>, vector<1x256xi32>
    %c0_i32_110 = arith.constant 0 : i32
    %165 = vector.broadcast %c0_i32_110 : i32 to vector<1x256xi32>
    %166 = arith.cmpi ne, %164, %165 : vector<1x256xi32>
    %cst_111 = arith.constant 0.000000e+00 : f32
    %167 = vector.shape_cast %166 : vector<1x256xi1> to vector<1x256xi1>
    %168 = vector.broadcast %167 : vector<1x256xi1> to vector<4x256xi1>
    %169 = vector.broadcast %cst_111 : f32 to vector<4x256xf32>
    %170 = arith.select %168, %163, %169 : vector<4x256xi1>, vector<4x256xf32>
    %c20_112 = arith.constant 20 : index
    %c0_113 = arith.constant 0 : index
    %171 = vector.load %arg9[%c20_112, %c0_113] : memref<36x256xf32, #tpu.memory_space<vmem>>, vector<4x256xf32>
    tpu.vector_store %arg9[%c20_112, %c0_113], %170 {strides = array<i32>} : memref<36x256xf32, #tpu.memory_space<vmem>>, vector<4x256xf32>,
    %c0_114 = arith.constant 0 : index
    %c49 = arith.constant 49 : index
    %172 = vector.load %arg8[%c0_114, %c49] : memref<4x324xf32, #tpu.memory_space<vmem>>, vector<4x256xf32>
    %c15 = arith.constant 15 : index
    %c0_115 = arith.constant 0 : index
    %173 = vector.load %arg2[%c15, %c0_115] : memref<18x256xi32, #tpu.memory_space<vmem>>, vector<1x256xi32>
    %c0_i32_116 = arith.constant 0 : i32
    %174 = vector.broadcast %c0_i32_116 : i32 to vector<1x256xi32>
    %175 = arith.cmpi ne, %173, %174 : vector<1x256xi32>
    %cst_117 = arith.constant 0.000000e+00 : f32
    %176 = vector.shape_cast %175 : vector<1x256xi1> to vector<1x256xi1>
    %177 = vector.broadcast %176 : vector<1x256xi1> to vector<4x256xi1>
    %178 = vector.broadcast %cst_117 : f32 to vector<4x256xf32>
    %179 = arith.select %177, %172, %178 : vector<4x256xi1>, vector<4x256xf32>
    %c24_118 = arith.constant 24 : index
    %c0_119 = arith.constant 0 : index
    %180 = vector.load %arg9[%c24_118, %c0_119] : memref<36x256xf32, #tpu.memory_space<vmem>>, vector<4x256xf32>
    tpu.vector_store %arg9[%c24_118, %c0_119], %179 {strides = array<i32>} : memref<36x256xf32, #tpu.memory_space<vmem>>, vector<4x256xf32>,
    %c0_120 = arith.constant 0 : index
    %c50 = arith.constant 50 : index
    %181 = vector.load %arg8[%c0_120, %c50] : memref<4x324xf32, #tpu.memory_space<vmem>>, vector<4x256xf32>
    %c16_121 = arith.constant 16 : index
    %c0_122 = arith.constant 0 : index
    %182 = vector.load %arg2[%c16_121, %c0_122] : memref<18x256xi32, #tpu.memory_space<vmem>>, vector<1x256xi32>
    %c0_i32_123 = arith.constant 0 : i32
    %183 = vector.broadcast %c0_i32_123 : i32 to vector<1x256xi32>
    %184 = arith.cmpi ne, %182, %183 : vector<1x256xi32>
    %cst_124 = arith.constant 0.000000e+00 : f32
    %185 = vector.shape_cast %184 : vector<1x256xi1> to vector<1x256xi1>
    %186 = vector.broadcast %185 : vector<1x256xi1> to vector<4x256xi1>
    %187 = vector.broadcast %cst_124 : f32 to vector<4x256xf32>
    %188 = arith.select %186, %181, %187 : vector<4x256xi1>, vector<4x256xf32>
    %c28_125 = arith.constant 28 : index
    %c0_126 = arith.constant 0 : index
    %189 = vector.load %arg9[%c28_125, %c0_126] : memref<36x256xf32, #tpu.memory_space<vmem>>, vector<4x256xf32>
    tpu.vector_store %arg9[%c28_125, %c0_126], %188 {strides = array<i32>} : memref<36x256xf32, #tpu.memory_space<vmem>>, vector<4x256xf32>,
    %c0_127 = arith.constant 0 : index
    %c51 = arith.constant 51 : index
    %190 = vector.load %arg8[%c0_127, %c51] : memref<4x324xf32, #tpu.memory_space<vmem>>, vector<4x256xf32>
    %c17_128 = arith.constant 17 : index
    %c0_129 = arith.constant 0 : index
    %191 = vector.load %arg2[%c17_128, %c0_129] : memref<18x256xi32, #tpu.memory_space<vmem>>, vector<1x256xi32>
    %c0_i32_130 = arith.constant 0 : i32
    %192 = vector.broadcast %c0_i32_130 : i32 to vector<1x256xi32>
    %193 = arith.cmpi ne, %191, %192 : vector<1x256xi32>
    %cst_131 = arith.constant 0.000000e+00 : f32
    %194 = vector.shape_cast %193 : vector<1x256xi1> to vector<1x256xi1>
    %195 = vector.broadcast %194 : vector<1x256xi1> to vector<4x256xi1>
    %196 = vector.broadcast %cst_131 : f32 to vector<4x256xf32>
    %197 = arith.select %195, %190, %196 : vector<4x256xi1>, vector<4x256xf32>
    %c32_132 = arith.constant 32 : index
    %c0_133 = arith.constant 0 : index
    %198 = vector.load %arg9[%c32_132, %c0_133] : memref<36x256xf32, #tpu.memory_space<vmem>>, vector<4x256xf32>
    tpu.vector_store %arg9[%c32_132, %c0_133], %197 {strides = array<i32>} : memref<36x256xf32, #tpu.memory_space<vmem>>, vector<4x256xf32>,
    %c0_134 = arith.constant 0 : index
    %c0_135 = arith.constant 0 : index
    %199 = vector.load %arg9[%c0_134, %c0_135] : memref<36x256xf32, #tpu.memory_space<vmem>>, vector<36x256xf32>
    %200 = arith.truncf %199 : vector<36x256xf32> to vector<36x256xbf16>
    %c0_136 = arith.constant 0 : index
    %c0_137 = arith.constant 0 : index
    %201 = vector.load %arg5[%c0_136, %c0_137] : memref<4x36xbf16, #tpu.memory_space<vmem>>, vector<4x36xbf16>
    %cst_138 = arith.constant dense<0.000000e+00> : vector<4x256xf32>
    %202 = tpu.matmul %201, %200, %cst_138 {dimension_numbers = #tpu.dot_dimension_numbers<[1], [0], [0], [1], [0, 0, 1, 1], [], []>} : vector<4x36xbf16>, vector<36x256xbf16>, vector<4x256xf32> -> vector<4x256xf32>
    %c0_139 = arith.constant 0 : index
    %c0_140 = arith.constant 0 : index
    %203 = vector.load %arg6[%c0_139, %c0_140] : memref<4x1xf32, #tpu.memory_space<vmem>>, vector<4x1xf32>
    %204 = vector.broadcast %203 : vector<4x1xf32> to vector<4x256xf32>
    %205 = arith.addf %202, %204 : vector<4x256xf32>
    %cst_141 = arith.constant dense<0.000000e+00> : vector<4xf32>
    %206 = vector.multi_reduction <add>, %205, %cst_141 [1] : vector<4x256xf32> to vector<4xf32>
    %207 = vector.shape_cast %206 : vector<4xf32> to vector<4x1xf32>
    %cst_142 = arith.constant 3.906250e-03 : f32
    %208 = vector.broadcast %cst_142 : f32 to vector<4x1xf32>
    %209 = arith.mulf %207, %208 : vector<4x1xf32>
    %210 = arith.mulf %205, %205 : vector<4x256xf32>
    %cst_143 = arith.constant dense<0.000000e+00> : vector<4xf32>
    %211 = vector.multi_reduction <add>, %210, %cst_143 [1] : vector<4x256xf32> to vector<4xf32>
    %212 = vector.shape_cast %211 : vector<4xf32> to vector<4x1xf32>
    %cst_144 = arith.constant 3.906250e-03 : f32
    %213 = vector.broadcast %cst_144 : f32 to vector<4x1xf32>
    %214 = arith.mulf %212, %213 : vector<4x1xf32>
    %215 = arith.mulf %209, %209 : vector<4x1xf32>
    %216 = arith.subf %214, %215 : vector<4x1xf32>
    %cst_145 = arith.constant 0.000000e+00 : f32
    %217 = vector.broadcast %cst_145 : f32 to vector<4x1xf32>
    %218 = arith.maximumf %216, %217 : vector<4x1xf32>
    %219 = vector.broadcast %209 : vector<4x1xf32> to vector<4x256xf32>
    %220 = arith.subf %205, %219 : vector<4x256xf32>
    %cst_146 = arith.constant 9.99999974E-6 : f32
    %221 = vector.broadcast %cst_146 : f32 to vector<4x1xf32>
    %222 = arith.addf %218, %221 : vector<4x1xf32>
    %223 = math.rsqrt %222 : vector<4x1xf32>
    %224 = vector.broadcast %223 : vector<4x1xf32> to vector<4x256xf32>
    %225 = arith.mulf %220, %224 : vector<4x256xf32>
    %226 = arith.addf %225, %1 : vector<4x256xf32>
    %c0_147 = arith.constant 0 : index
    %c0_148 = arith.constant 0 : index
    %c0_149 = arith.constant 0 : index
    %227 = vector.load %arg7[%c0_147, %c0_148, %c0_149] : memref<1x4x256xf32, #tpu.memory_space<vmem>>, vector<1x4x256xf32>
    %228 = vector.shape_cast %227 : vector<1x4x256xf32> to vector<4x256xf32>
    %229 = vector.shape_cast %226 : vector<4x256xf32> to vector<1x4x256xf32>
    tpu.vector_store %arg7[%c0_147, %c0_148, %c0_149], %229 {strides = array<i32>} : memref<1x4x256xf32, #tpu.memory_space<vmem>>, vector<1x4x256xf32>,
    return
  }
  func.func @transform_0(%arg0: i32) -> (i32, i32, i32) {
    %c0_i32 = arith.constant 0 : i32
    %c0_i32_0 = arith.constant 0 : i32
    %c0_i32_1 = arith.constant 0 : i32
    return %arg0, %c0_i32, %c0_i32_0 : i32, i32, i32
  }
  func.func @transform_1(%arg0: i32) -> (i32, i32) {
    %c0_i32 = arith.constant 0 : i32
    %c0_i32_0 = arith.constant 0 : i32
    %c0_i32_1 = arith.constant 0 : i32
    return %c0_i32, %c0_i32_0 : i32, i32
  }
  func.func @transform_2(%arg0: i32) -> (i32, i32) {
    %c0_i32 = arith.constant 0 : i32
    %c0_i32_0 = arith.constant 0 : i32
    %c0_i32_1 = arith.constant 0 : i32
    return %c0_i32, %c0_i32_0 : i32, i32
  }
  func.func @transform_3(%arg0: i32) -> (i32, i32) {
    %c0_i32 = arith.constant 0 : i32
    %c0_i32_0 = arith.constant 0 : i32
    %c0_i32_1 = arith.constant 0 : i32
    return %c0_i32, %c0_i32_0 : i32, i32
  }
  func.func @transform_4(%arg0: i32) -> (i32, i32) {
    %c0_i32 = arith.constant 0 : i32
    %c0_i32_0 = arith.constant 0 : i32
    %c0_i32_1 = arith.constant 0 : i32
    return %c0_i32, %c0_i32_0 : i32, i32
  }
  func.func @transform_5(%arg0: i32) -> (i32, i32) {
    %c0_i32 = arith.constant 0 : i32
    %c0_i32_0 = arith.constant 0 : i32
    %c0_i32_1 = arith.constant 0 : i32
    return %c0_i32, %c0_i32_0 : i32, i32
  }
  func.func @transform_6(%arg0: i32) -> (i32, i32, i32) {
    %c0_i32 = arith.constant 0 : i32
    %c0_i32_0 = arith.constant 0 : i32
    %c0_i32_1 = arith.constant 0 : i32
    return %arg0, %c0_i32, %c0_i32_0 : i32, i32, i32
  }
}

</mosaic_0001>

<bundles_post_ra>
// kernel: residual_block.1
= control target key start
LH: loop header
LB: loop body
LE: loop exit
PB: predicated region body
PF: predicated region fallthrough
CT: control target
= control target key end

     0   :  { %s1322_s21 = smov 0   ;;  %s1729_s0 = inlined_call_operand.vmem [shape: f32[2,4,256], index: 0, kind: input, shape index: {}]   ;;  %s1730_s1 = inlined_call_operand.vmem [shape: s32[18,256], index: 1, kind: input, shape index: {}]   ;;  %s1731_s2 = inlined_call_operand.vmem [shape: bf16[4,36], index: 2, kind: input, shape index: {}]   ;;  %s1732_s3 = inlined_call_operand.vmem [shape: f32[4,1], index: 3, kind: input, shape index: {}]   ;;  %s1733_s4 = inlined_call_operand.vmem [shape: bf16[4,36], index: 4, kind: input, shape index: {}]   ;;  %s1734_s5 = inlined_call_operand.vmem [shape: f32[4,1], index: 5, kind: input, shape index: {}]   ;;  %s1735_s6 = inlined_call_operand.vmem [shape: f32[2,4,256], index: 6, kind: output, shape index: {}]  }
   0x1 LB: > { %s1189_s22 = sadd.s32 4294967295, %s1266_s21   ;;  %p1193_p0 = scmp.ge.s32.totalorder %s1266_s21, 1  ;;  %s1266_s21 = sphi %s1322_s21, %s16_s21  }
   0x2   : > { %p212_p1 = scmp.lt.s32.totalorder %s1266_s21, 3 }
   0x4   : > { %p213_p2 = pnand %p1193_p0, %p212_p1 }
   0x5   : > { %p242_p3 = scmp.lt.s32.totalorder (!%p213_p2), %s1189_s22, 1  ;;  %vm254_vm0 = vcmask (!%p213_p2), 273408   ;;  %vm256_vm1 = vcmask (!%p213_p2), 552208   ;;  %v1268_v0 = vmov (!%p213_p2), 0.0   ;;  %v1269_v1 = vmov (!%p213_p2), 0   ;;  %s1270_s27 = smov (!%p213_p2), 34  }
   0x6   : > { %216 = sbr.rel (%p213_p2) target bundleno = 1402 (0x57a), region = 44  ;;  %255 = vst.msk [vmem:[#allocation2] sm:$0xf] (!%p213_p2), %vm254_vm0, %v1268_v0  ;;  %654 = vmatprep.mubr.bf16.mxu0 (!%p213_p2), %v1269_v1  ;;  %1250 = vset.pattern.permute.xlu1 (!%p213_p2), %v1269_v1  ;;  %v275_v3 = vlaneseq (!%p213_p2)  ;;  %v272_v4 = vld [vmem:[%s1730_s1] ss:$8 sm:$0x3] (!%p213_p2) }
   0x7   : > { %257 = vst.msk [vmem:[#allocation2 + $0x8] sm:$0xf] (!%p213_p2), %vm256_vm1, %v1268_v0  ;;  %1093 = vmatprep.mubr.bf16.mxu1 (!%p213_p2), %v1269_v1  ;;  %1251 = vset.pattern.permute.xlu0 (!%p213_p2), %v1269_v1  ;;  %vm266_vm2 = vcmask (!%p213_p2), 1043728   ;;  %vm267_vm3 = vcmask (!%p213_p2), 1047556   ;;  %vm262_vm4 = vcmask (!%p213_p2), 277504   ;;  %vm273_vm5 = vcmp.ne.s32.totalorder (!%p213_p2), %v272_v4, 0 }
   0x8   : > { %v276_v5 = vshrl.u32 (!%p213_p2), %v275_v3, 7  ;;  %vm1350_vm6 = vmor (!%p213_p2), %vm267_vm3, %vm266_vm2  ;;  %v274_v12 = vsel (!%p213_p2), %vm273_vm5, 1, %v1269_v1  ;;  %s1271_s30 = smov (!%p213_p2), 96   ;;  %s1272_s7 = smov (!%p213_p2), 126   ;;  %v605_v27 = vld [vmem:[%s1732_s3] sm:$0xf] (!%p213_p2) }
   0x9   : > { %s1273_s8 = smov (!%p213_p2), 124   ;;  %s1274_s9 = smov (!%p213_p2), 92   ;;  %v1198_v32 = vld [vmem:[%s1730_s1 + $0x1] ss:$8 sm:$0x3] (!%p213_p2)  ;;  %vm317_vm12 = vcmask (!%p213_p2), 1031168  }
   0xa   : > { %v1354_v9 = vsub.s32 (!%p213_p2), 0, %v276_v5  ;;  %v1358_v11 = vsub.s32 (!%p213_p2), 1, %v276_v5  ;;  %s1275_s10 = smov (!%p213_p2), 62   ;;  %s1276_s11 = smov (!%p213_p2), 94   ;;  %vm296_vm9 = vcmp.ne.s32.totalorder (!%p213_p2), %v1198_v32, 0  ;;  %vm465_vm5 = vcmask (!%p213_p2), 752640  }
   0xb   : > { %s1277_s12 = smov (!%p213_p2), 64   ;;  %s1278_s13 = smov (!%p213_p2), 60   ;;  %v1202_v35 = vld [vmem:[%s1730_s1 + $0x5] ss:$8 sm:$0x3] (!%p213_p2)  ;;  %v297_v38 = vsel (!%p213_p2), %vm296_vm9, 1, %v1269_v1 }
   0xc   : > { %v278_v13 = vrot.slane (!%p213_p2), %v274_v12, %v1354_v9  ;;  %v282_v14 = vrot.slane (!%p213_p2), %v274_v12, %v1358_v11  ;;  %vm444_vm10 = vcmp.ne.s32.totalorder (!%p213_p2), %v1202_v35, 0  ;;  %v1200_v39 = vld [vmem:[%s1730_s1 + $0x3] ss:$8 sm:$0x3] (!%p213_p2)  ;;  %v301_v40 = vrot.slane (!%p213_p2), %v297_v38, %v1354_v9  ;;  %v604_v35 = vld [vmem:[%s1731_s2] sm:$0x3] (!%p213_p2) }
   0xd   : > { %s1783_s22 = smov (!%p242_p3, %s1189_s22), 1  ;;  %v305_v41 = vrot.slane %v297_v38, %v1358_v11  ;;  %v1204_v42 = vld [vmem:[%s1730_s1 + $0x7] ss:$8 sm:$0x3]  ;;  %v445_v45 = vsel %vm444_vm10, 1, %v1269_v1  ;;  %vm370_vm11 = vcmp.ne.s32.totalorder %v1200_v39, 0 }
   0xe   : > { %s1221_s23 = sshll.u32 %s1783_s22, 3  ;;  %vm283_vm7 = vcmp.eq.s32.totalorder %v278_v13, 1  ;;  %vm284_vm8 = vcmp.eq.s32.totalorder %v282_v14, 1  ;;  %v1199_v46 = vld [vmem:[%s1730_s1 + $0x2] ss:$8 sm:$0x3]  ;;  %v449_v50 = vrot.slane %v445_v45, %v1354_v9  ;;  %v453_v57 = vrot.slane %v445_v45, %v1358_v11 }
   0xf   : > { %s1343_s26 = scalar_lea.vmem %s1729_s0, %s1221_s23  ;;  %vm518_vm13 = vcmp.ne.s32.totalorder %v1204_v42, 0  ;;  %v1201_v47 = vld [vmem:[%s1730_s1 + $0x4] ss:$8 sm:$0x3]  ;;  %vm306_vm14 = vcmp.eq.s32.totalorder %v301_v40, 1  ;;  %vm307_vm15 = vcmp.eq.s32.totalorder %v305_v41, 1 }
  0x10   : > { %v253_v2 = vld [vmem:[%s1343_s26] sm:$0xff]  ;;  %v371_v51 = vsel %vm370_vm11, 1, %v1269_v1  ;;  %vm336_vm1 = vcmp.ne.s32.totalorder %v1199_v46, 0  ;;  %v519_v54 = vsel %vm518_vm13, 1, %v1269_v1  ;;  %vm410_vm2 = vcmp.ne.s32.totalorder %v1201_v47, 0  ;;  %s1279_s16 = smov 110  }
  0x11   : > { %259 = vrot.lane.b32.xlu0 %v253_v2, %s1270_s27  ;;  %v375_v60 = vrot.slane %v371_v51, %v1354_v9  ;;  %v337_v61 = vsel %vm336_vm1, 1, %v1269_v1  ;;  %v1203_v62 = vld [vmem:[%s1730_s1 + $0x6] ss:$8 sm:$0x3]  ;;  %v379_v2 = vrot.slane %v371_v51, %v1358_v11  ;;  %v523_v3 = vrot.slane %v519_v54, %v1354_v9  ;;  %s1280_s17 = smov 95   ;;  %s1281_s18 = smov 111  }
  0x12   : > { %v527_v4 = vrot.slane %v519_v54, %v1358_v11  ;;  %v411_v5 = vsel %vm410_vm2, 1, %v1269_v1  ;;  %vm1429_vm3 = vcmp.eq.s32.totalorder %v449_v50, 1  ;;  %vm484_vm9 = vcmp.ne.s32.totalorder %v1203_v62, 0  ;;  %s1283_s19 = smov 109   ;;  %s1284_s20 = smov 77  }
  0x13   : > { %vm1438_vm10 = vcmp.eq.s32.totalorder %v375_v60, 1  ;;  %vm539_vm11 = vcmask 506880   ;;  %v345_v13 = vrot.slane %v337_v61, %v1358_v11  ;;  %v415_v14 = vrot.slane %v411_v5, %v1354_v9  ;;  %s1285_s24 = smov 78   ;;  %s1286_s25 = smov 79  }
  0x14   : > { %vm1448_vm13 = vcmp.eq.s32.totalorder %v523_v3, 1  ;;  %vm431_vm2 = vcmask 769024  }
  0x83   : > { %v260_v6 = vpop.permute.xlu0 %259 }
  0x84   : > { %v261_v8 = vrot.slane %v260_v6, 4 }
  0x86   : > { %v263_v10 = vsel %vm262_vm4, %v261_v8, %v260_v6  ;;  %270 = vst.msk [vmem:[#allocation2 + $0x8] sm:$0xf] %vm254_vm0, %v261_v8 }
  0x87   : > { %269 = vst.msk [vmem:[#allocation2] sm:$0xff] %vm1350_vm6, %v263_v10  ;;  %v341_v10 = vrot.slane %v337_v61, %v1354_v9 }
  0x89   : > { %vm1468_vm1 = vcmp.eq.s32.totalorder %v341_v10, 1 }
  0x8d   : > { %v367_v15 = vld [vmem:[#allocation2 + $0x8] sm:$0xf] }
  0x8e   : > { %v293_v16 = vld [vmem:[#allocation2 + $0x8] sm:$0xf]  ;;  %v271_v17 = vld [vmem:[#allocation2] sm:$0xff]  ;;  %389 = vrot.lane.b32.xlu0 %v367_v15, %s1271_s30 }
  0x8f   : > { %315 = vrot.lane.b32.xlu1 %v293_v16, %s1272_s7  ;;  %v310_v18 = vcombine.high %v271_v17, %v271_v17  ;;  %v288_v19 = vsel %vm283_vm7, %v271_v17, 0.0  ;;  %v333_v20 = vld [vmem:[#allocation2 + $0x8] sm:$0xf]  ;;  %vm1433_vm7 = vcmp.eq.s32.totalorder %v453_v57, 1 }
  0x90   : > { %v441_v21 = vld [vmem:[#allocation2 + $0x8] sm:$0xf]  ;;  %290 = vst [vmem:[#allocation3] sm:$0xf] %v288_v19 }
  0x91   : > { %v289_v22 = vsel %vm284_vm8, %v310_v18, 0.0  ;;  %v515_v23 = vld [vmem:[#allocation2 + $0x8] sm:$0xf]  ;;  %vm391_vm8 = vcmask 785408  }
  0x92   : > { %355 = vrot.lane.b32.xlu0 %v333_v20, %s1273_s8  ;;  %291 = vst [vmem:[#allocation3 + $0x8] sm:$0xf] %v289_v22  ;;  %v407_v24 = vld [vmem:[#allocation2 + $0x8] sm:$0xf]  ;;  %v419_v20 = vrot.slane %v411_v5, %v1358_v11 }
  0x93   : > { %463 = vrot.lane.b32.xlu1 %v441_v21, %s1274_s9  ;;  %v481_v25 = vld [vmem:[#allocation2 + $0x8] sm:$0xf] }
  0x94   : > { %v555_v26 = vld [vmem:[#allocation2 + $0x8] sm:$0xf] }
  0x96   : > { %385 = vrot.lane.b32.xlu0 %v271_v17, %s1271_s30 }
  0x97   : > { %537 = vrot.lane.b32.xlu1 %v515_v23, %s1275_s10  ;;  %v485_v23 = vsel %vm484_vm9, 1, %v1269_v1  ;;  %vm1476_vm9 = vcmp.eq.s32.totalorder %v415_v14, 1 }
  0x98   : > { %v489_v40 = vrot.slane %v485_v23, %v1354_v9  ;;  %v493_v41 = vrot.slane %v485_v23, %v1358_v11 }
  0x9a   : > { %459 = vrot.lane.b32.xlu0 %v271_v17, %s1274_s9 }
  0x9b   : > { %429 = vrot.lane.b32.xlu1 %v407_v24, %s1276_s11  ;;  %v1205_v24 = vld [vmem:[%s1730_s1 + $0x10] ss:$8 sm:$0x3] }
  0x9e   : > { %425 = vrot.lane.b32.xlu0 %v271_v17, %s1276_s11 }
  0x9f   : > { %503 = vrot.lane.b32.xlu1 %v481_v25, %s1277_s12 }
  0xa2   : > { %313 = vrot.lane.b32.xlu0 %v310_v18, %s1272_s7 }
  0xa3   : > { %311 = vrot.lane.b32.xlu1 %v271_v17, %s1272_s7 }
  0xa6   : > { %573 = vrot.lane.b32.xlu0 %v271_v17, %s1278_s13 }
  0xa7   : > { %351 = vrot.lane.b32.xlu1 %v271_v17, %s1273_s8 }
  0xaa   : > { %461 = vrot.lane.b32.xlu0 %v310_v18, %s1274_s9 }
  0xab   : > { %533 = vrot.lane.b32.xlu1 %v271_v17, %s1275_s10 }
  0xae   : > { %535 = vrot.lane.b32.xlu0 %v310_v18, %s1275_s10 }
  0xaf   : > { %387 = vrot.lane.b32.xlu1 %v310_v18, %s1271_s30 }
  0xb2   : > { %427 = vrot.lane.b32.xlu0 %v310_v18, %s1276_s11 }
  0xb3   : > { %353 = vrot.lane.b32.xlu1 %v310_v18, %s1273_s8 }
  0xb6   : > { %501 = vrot.lane.b32.xlu0 %v310_v18, %s1277_s12 }
  0xb7   : > { %499 = vrot.lane.b32.xlu1 %v271_v17, %s1277_s12 }
  0xba   : > { %577 = vrot.lane.b32.xlu0 %v555_v26, %s1278_s13 }
  0xbb   : > { %575 = vrot.lane.b32.xlu1 %v310_v18, %s1278_s13 }
  0xbf   : > { %608 = vperm.xlu1 %1250, %v605_v27  }
 0x100   : > { %v1374_v28 = vpop.permute.xlu0 %389 }
 0x101   : > { %v316_v29 = vpop.permute.xlu1 %315 }
 0x104   : > { %v1376_v30 = vpop.permute.xlu0 %355 }
 0x105   : > { %v1378_v31 = vpop.permute.xlu1 %463 }
 0x108   : > { %v1385_v34 = vpop.permute.xlu0 %385 }
 0x109   : > { %v1383_v33 = vpop.permute.xlu1 %537 }
 0x10c   : > { %v460_v37 = vpop.permute.xlu0 %459 }
 0x10d   : > { %v1390_v36 = vpop.permute.xlu1 %429 }
 0x110   : > { %v1403_v44 = vpop.permute.xlu0 %425 }
 0x111   : > { %v1401_v43 = vpop.permute.xlu1 %503 }
 0x114   : > { %v314_v49 = vpop.permute.xlu0 %313 }
 0x115   : > { %v312_v48 = vpop.permute.xlu1 %311  ;;  %v319_v53 = vsel %vm317_vm12, %v314_v49, %v316_v29 }
 0x116   : > { %v318_v52 = vsel %vm317_vm12, %v312_v48, %v314_v49  ;;  %v323_v56 = vsel %vm307_vm15, %v319_v53, 0.0  ;;  %vm1444_vm12 = vcmp.eq.s32.totalorder %v379_v2, 1  ;;  %vm357_vm15 = vcmask 1014784  }
 0x117   : > { %v322_v55 = vsel %vm306_vm14, %v318_v52, 0.0  ;;  %v327_v59 = vrot.slane %v323_v56, 4  ;;  %vm1452_vm14 = vcmp.eq.s32.totalorder %v527_v4, 1 }
 0x118   : > { %v326_v58 = vrot.slane %v322_v55, 4  ;;  %v1423_v0 = vpop.permute.xlu0 %573 }
 0x119   : > { %v1421_v63 = vpop.permute.xlu1 %351  ;;  %331 = vst [vmem:[#allocation3 + $0x8] sm:$0xf0] %v327_v59 }
 0x11a   : > { %330 = vst [vmem:[#allocation3] sm:$0xf0] %v326_v58 }
 0x11c   : > { %v462_v16 = vpop.permute.xlu0 %461 }
 0x11d   : > { %v534_v15 = vpop.permute.xlu1 %533  ;;  %v466_v21 = vsel %vm465_vm5, %v460_v37, %v462_v16  ;;  %v467_v22 = vsel %vm465_vm5, %v462_v16, %v1378_v31  ;;  %vm1472_vm5 = vcmp.eq.s32.totalorder %v345_v13, 1 }
 0x11e   : > { %v470_v25 = vsel %vm1429_vm3, %v466_v21, 0.0  ;;  %v471_v26 = vsel %vm1433_vm7, %v467_v22, 0.0  ;;  %vm1480_vm3 = vcmp.eq.s32.totalorder %v419_v20, 1  ;;  %vm558_vm7 = vcmp.ne.s32.totalorder %v1205_v24, 0 }
 0x11f   : > { %v474_v29 = vrot.slane %v470_v25, 4  ;;  %v475_v31 = vrot.slane %v471_v26, 4 }
 0x120   : > { %v536_v38 = vpop.permute.xlu0 %535  ;;  %v589_v14 = vld [vmem:[#allocation3 + $0x8] sm:$0xff] }
 0x121   : > { %v388_v37 = vpop.permute.xlu1 %387  ;;  %478 = vst [vmem:[#allocation3 + $0x20] sm:$0xf0] %v474_v29  ;;  %479 = vst [vmem:[#allocation3 + $0x28] sm:$0xf0] %v475_v31  ;;  %v540_v46 = vsel %vm539_vm11, %v534_v15, %v536_v38  ;;  %v541_v47 = vsel %vm539_vm11, %v536_v38, %v1383_v33  ;;  %v559_v33 = vsel %vm558_vm7, 1, %v1269_v1  ;;  %vm495_vm11 = vcmp.eq.s32.totalorder %v493_v41, 1 }
 0x122   : > { %v392_v42 = vsel %vm391_vm8, %v1385_v34, %v388_v37  ;;  %v393_v45 = vsel %vm391_vm8, %v388_v37, %v1374_v28  ;;  %v544_v50 = vsel %vm1448_vm13, %v540_v46, 0.0  ;;  %v545_v34 = vsel %vm1452_vm14, %v541_v47, 0.0  ;;  %v588_v18 = vld [vmem:[#allocation3] sm:$0xff] }
 0x123   : > { %v396_v48 = vsel %vm1438_vm10, %v392_v42, 0.0  ;;  %v397_v49 = vsel %vm1444_vm12, %v393_v45, 0.0  ;;  %v548_v28 = vrot.slane %v544_v50, 4  ;;  %v549_v53 = vrot.slane %v545_v34, 4 }
 0x124   : > { %v400_v51 = vrot.slane %v396_v48, 4  ;;  %v401_v52 = vrot.slane %v397_v49, 4  ;;  %v428_v55 = vpop.permute.xlu0 %427  ;;  %vm505_vm8 = vcmask 523264   ;;  %vm494_vm10 = vcmp.eq.s32.totalorder %v489_v40, 1 }
 0x125   : > { %v354_v54 = vpop.permute.xlu1 %353  ;;  %552 = vst [vmem:[#allocation3 + $0x30] sm:$0xf0] %v548_v28  ;;  %553 = vst [vmem:[#allocation3 + $0x38] sm:$0xf0] %v549_v53  ;;  %v432_v58 = vsel %vm431_vm2, %v1403_v44, %v428_v55  ;;  %v433_v59 = vsel %vm431_vm2, %v428_v55, %v1390_v36  ;;  %v567_v36 = vrot.slane %v559_v33, %v1358_v11  ;;  %vm579_vm12 = vcmask 490496  }
 0x126   : > { %404 = vst [vmem:[#allocation3 + $0x10] sm:$0xf0] %v400_v51  ;;  %405 = vst [vmem:[#allocation3 + $0x18] sm:$0xf0] %v401_v52  ;;  %v358_v56 = vsel %vm357_vm15, %v1421_v63, %v354_v54  ;;  %v359_v57 = vsel %vm357_vm15, %v354_v54, %v1376_v30  ;;  %v436_v62 = vsel %vm1476_vm9, %v432_v58, 0.0  ;;  %v437_v63 = vsel %vm1480_vm3, %v433_v59, 0.0 }
 0x127   : > { %v362_v60 = vsel %vm1468_vm1, %v358_v56, 0.0  ;;  %v363_v61 = vsel %vm1472_vm5, %v359_v57, 0.0  ;;  %438 = vst [vmem:[#allocation3 + $0x20] sm:$0xf] %v436_v62  ;;  %439 = vst [vmem:[#allocation3 + $0x28] sm:$0xf] %v437_v63  ;;  %v563_v30 = vrot.slane %v559_v33, %v1354_v9 }
 0x128   : > { %364 = vst [vmem:[#allocation3 + $0x10] sm:$0xf] %v362_v60  ;;  %365 = vst [vmem:[#allocation3 + $0x18] sm:$0xf] %v363_v61  ;;  %v502_v2 = vpop.permute.xlu0 %501  ;;  %vm569_vm14 = vcmp.eq.s32.totalorder %v567_v36, 1  ;;  %vm615_vm15 = vcmask 1041408  }
 0x129   : > { %v500_v44 = vpop.permute.xlu1 %499  ;;  %v507_v4 = vsel %vm505_vm8, %v502_v2, %v1401_v43  ;;  %vm568_vm13 = vcmp.eq.s32.totalorder %v563_v30, 1  ;;  %vm611_vm1 = vcmask 293888   ;;  %vm663_vm5 = vcmask 1043456  }
 0x12a   : > { %v506_v3 = vsel %vm505_vm8, %v500_v44, %v502_v2  ;;  %v511_v6 = vsel %vm495_vm11, %v507_v4, 0.0  ;;  %vm759_vm9 = vcmask 900096   ;;  %vm833_vm8 = vcmask 777216  }
 0x12b   : > { %v510_v5 = vsel %vm494_vm10, %v506_v3, 0.0  ;;  %513 = vst [vmem:[#allocation3 + $0x38] sm:$0xf] %v511_v6 }
 0x12c   : > { %512 = vst [vmem:[#allocation3 + $0x30] sm:$0xf] %v510_v5  ;;  %v578_v10 = vpop.permute.xlu0 %577 }
 0x12d   : > { %v576_v8 = vpop.permute.xlu1 %575 }
 0x12e   : > { %v580_v12 = vsel %vm579_vm12, %v1423_v0, %v576_v8  ;;  %v581_v13 = vsel %vm579_vm12, %v576_v8, %v578_v10  ;;  %v593_v21 = vld [vmem:[#allocation3 + $0x28] sm:$0xff]  ;;  %v592_v23 = vld [vmem:[#allocation3 + $0x20] sm:$0xff] }
 0x12f   : > { %v584_v15 = vsel %vm568_vm13, %v580_v12, 0.0  ;;  %v585_v16 = vsel %vm569_vm14, %v581_v13, 0.0  ;;  %v591_v17 = vld [vmem:[#allocation3 + $0x18] sm:$0xff]  ;;  %v590_v19 = vld [vmem:[#allocation3 + $0x10] sm:$0xff]  ;;  %vm725_vm13 = vcmask 908288  }
 0x130   : > { %586 = vst [vmem:[#allocation3 + $0x40] sm:$0xf] %v584_v15  ;;  %587 = vst [vmem:[#allocation3 + $0x48] sm:$0xf] %v585_v16  ;;  %v599_v43 = vpack.c.bf16 %v591_v17, %v589_v14  ;;  %v598_v20 = vpack.c.bf16 %v590_v19, %v588_v18  ;;  %v1046_v18 = vld [vmem:[%s1734_s5] sm:$0xf] }
 0x132   : > { %622 = vmatprep.subr.bf16.mxu0 %v599_v43  ;;  %v595_v22 = vld [vmem:[#allocation3 + $0x38] sm:$0xff] }
 0x133   : > { %623 = vmatpush1.bf16.msra.mxu0 %v598_v20  ;;  %v594_v24 = vld [vmem:[#allocation3 + $0x30] sm:$0xff]  ;;  %v601_v25 = vpack.c.bf16 %v595_v22, %v593_v21  ;;  %v1209_v22 = vld [vmem:[%s1730_s1 + $0x12] ss:$8 sm:$0x3] }
 0x134   : > { %v600_v26 = vpack.c.bf16 %v594_v24, %v592_v23 }
 0x135   : > { %624 = vmatprep.subr.bf16.mxu0 %v601_v25  ;;  %v1211_v25 = vld [vmem:[%s1730_s1 + $0x14] ss:$8 sm:$0x3] }
 0x137   : > { %625 = vmatpush1.bf16.msra.mxu0 %v600_v26  ;;  %v597_v0 = vld [vmem:[#allocation3 + $0x48] sm:$0xf]  ;;  %v596_v27 = vld [vmem:[#allocation3 + $0x40] sm:$0xf] }
 0x138   : > { %v603_v29 = vpack.c.bf16 %v597_v0, %v597_v0  ;;  %v602_v31 = vpack.c.bf16 %v596_v27, %v596_v27 }
 0x13a   : > { %1206 = vmatprep.subr.msk.bf16.mxu0 %vm615_vm15, %v603_v29  ;;  %v617_v32 = vsel %vm615_vm15, %v602_v31, 0  ;;  %v1208_v29 = vld [vmem:[%s1730_s1 + $0x11] ss:$8 sm:$0x3] }
 0x13b   : > { %627 = vmatpush1.bf16.msra.mxu0 %v617_v32 }
 0x13e   : > { %1207 = vmatmul.mubr.msk.bf16.vlgmr.msra.gmra.mrb[0].mxu0 %vm611_vm1, %v604_v35  ;;  %v609_v37 = vpop.permute.xlu1 %608 }
 0x211   : > { %v656_v38 = vpop.f32.mrb[0].mxu0 }
 0x212   : > { %v657_v39 = vadd.f32 %v656_v38, %v609_v37  ;;  %v658_v40 = vpop.f32.mrb[1].mxu0 }
 0x213   : > { %v659_v41 = vadd.f32 %v658_v40, %v609_v37  ;;  %v660_v42 = vpop.f32.mrb[2].mxu0  ;;  %v1210_v40 = vld [vmem:[%s1730_s1 + $0x13] ss:$8 sm:$0x3] }
 0x214   : > { %v661_v45 = vpop.f32.mrb[3].mxu0  ;;  %v664_v46 = vsel %vm663_vm5, %v657_v39, 0.0  ;;  %v670_v47 = vmul.f32 %v657_v39, %v657_v39  ;;  %vm778_vm10 = vcmp.ne.s32.totalorder %v1210_v40, 0 }
 0x215   : > { %v665_v48 = vsel %vm663_vm5, %v659_v41, 0.0  ;;  %v671_v49 = vmul.f32 %v659_v41, %v659_v41 }
 0x216   : > { %v666_v50 = vadd.f32 %v665_v48, %v664_v46  ;;  %v672_v34 = vsel %vm663_vm5, %v670_v47, 0.0 }
 0x217   : > { %v673_v51 = vsel %vm663_vm5, %v671_v49, 0.0 }
 0x218   : > { %667 = vadd.xlane.f32.xlu0 %v666_v50  ;;  %v674_v52 = vadd.f32 %v673_v51, %v672_v34  ;;  %v1213_v34 = vld [vmem:[%s1730_s1 + $0x16] ss:$8 sm:$0x3] }
 0x219   : > { %vm885_vm12 = vcmp.ne.s32.totalorder %v1213_v34, 0 }
 0x21a   : > { %675 = vadd.xlane.f32.xlu1 %v674_v52 }
 0x2a5   : > { %v668_v28 = vpop.xlane.xlu0 %667 }
 0x2a6   : > { %v669_v53 = vmul.f32 0.00390625, %v668_v28 }
 0x2a7   : > { %v676_v54 = vpop.xlane.xlu1 %675 }
 0x2a8   : > { %v677_v55 = vmul.f32 0.00390625, %v676_v54  ;;  %v678_v33 = vmul.f32 %v669_v53, %v669_v53  ;;  %v681_v59 = vsub.f32 %v657_v39, %v669_v53  ;;  %v682_v60 = vsub.f32 %v659_v41, %v669_v53 }
 0x2aa   : > { %v679_v56 = vsub.f32 %v677_v55, %v678_v33  ;;  %v779_v33 = vsel %vm778_vm10, 1, %v1269_v1 }
 0x2ac   : > { %v680_v57 = vmax.f32 %v679_v56, 0.0 }
 0x2ae   : > { %v683_v58 = vadd.f32 1e-05, %v680_v57 }
 0x2b0   : > { %1255 = vrsqrt.f32 %v683_v58  ;;  %v1215_v58 = vld [vmem:[%s1730_s1 + $0x20] ss:$8 sm:$0x3] }
 0x2ba   : > { %v1256_v61 = vpop.eup %1255 }
 0x2bb   : > { %v685_v62 = vmul.f32 %v1256_v61, %v681_v59  ;;  %v686_v63 = vmul.f32 %v1256_v61, %v682_v60 }
 0x2bd   : > { %v687_v30 = vmax.f32 %v685_v62, 0.0  ;;  %v688_v36 = vmax.f32 %v686_v63, 0.0 }
 0x2bf   : > { %v691_v44 = vcombine.low %v687_v30, %v688_v36  ;;  %v787_v30 = vrot.slane %v779_v33, %v1358_v11  ;;  %v1212_v36 = vld [vmem:[%s1730_s1 + $0x15] ss:$8 sm:$0x3] }
 0x2c1   : > { %692 = vrot.lane.b32.xlu0 %v691_v44, %s1270_s27  ;;  %s1282_s27 = smov 93  }
 0x333   : > { %v693_v2 = vpop.permute.xlu0 %692 }
 0x334   : > { %v694_v3 = vrot.slane %v693_v2, 4 }
 0x336   : > { %v695_v4 = vsel %vm262_vm4, %v694_v3, %v693_v2  ;;  %699 = vst.msk [vmem:[#allocation2 + $0x8] sm:$0xf] %vm254_vm0, %v694_v3  ;;  %vm738_vm0 = vcmp.ne.s32.totalorder %v1209_v22, 0  ;;  %vm812_vm4 = vcmp.ne.s32.totalorder %v1211_v25, 0  ;;  %v783_v2 = vrot.slane %v779_v33, %v1354_v9 }
 0x337   : > { %698 = vst.msk [vmem:[#allocation2] sm:$0xff] %vm1350_vm6, %v695_v4  ;;  %v739_v27 = vsel %vm738_vm0, 1, %v1269_v1  ;;  %v813_v37 = vsel %vm812_vm4, 1, %v1269_v1  ;;  %vm704_vm6 = vcmp.ne.s32.totalorder %v1208_v29, 0  ;;  %v886_v3 = vsel %vm885_vm12, 1, %v1269_v1 }
 0x338   : > { %v743_v32 = vrot.slane %v739_v27, %v1354_v9  ;;  %v747_v35 = vrot.slane %v739_v27, %v1358_v11  ;;  %v821_v39 = vrot.slane %v813_v37, %v1358_v11  ;;  %v705_v45 = vsel %vm704_vm6, 1, %v1269_v1  ;;  %v1214_v22 = vld [vmem:[%s1730_s1 + $0x17] ss:$8 sm:$0x3] }
 0x339   : > { %v709_v53 = vrot.slane %v705_v45, %v1354_v9  ;;  %v713_v54 = vrot.slane %v705_v45, %v1358_v11  ;;  %v817_v57 = vrot.slane %v813_v37, %v1354_v9  ;;  %vm959_vm4 = vcmp.ne.s32.totalorder %v1215_v58, 0 }
 0x33a   : > { %vm748_vm3 = vcmp.eq.s32.totalorder %v743_v32, 1  ;;  %vm749_vm7 = vcmp.eq.s32.totalorder %v747_v35, 1  ;;  %vm1576_vm11 = vcmp.eq.s32.totalorder %v821_v39, 1  ;;  %vm1627_vm10 = vcmp.eq.s32.totalorder %v783_v2, 1 }
 0x33b   : > { %vm1597_vm14 = vcmp.eq.s32.totalorder %v709_v53, 1  ;;  %vm1601_vm0 = vcmp.eq.s32.totalorder %v713_v54, 1  ;;  %vm1611_vm6 = vcmp.eq.s32.totalorder %v817_v57, 1 }
 0x33d   : > { %v735_v5 = vld [vmem:[#allocation2 + $0x8] sm:$0xf] }
 0x33e   : > { %757 = vrot.lane.b32.xlu0 %v735_v5, %s1279_s16  ;;  %v734_v6 = vld [vmem:[#allocation2] sm:$0xff]  ;;  %v809_v8 = vld [vmem:[#allocation2 + $0x8] sm:$0xf] }
 0x33f   : > { %753 = vrot.lane.b32.xlu1 %v734_v6, %s1279_s16  ;;  %v701_v10 = vld [vmem:[#allocation2 + $0x8] sm:$0xf]  ;;  %v752_v13 = vcombine.high %v734_v6, %v734_v6 }
 0x340   : > { %v775_v12 = vld [vmem:[#allocation2 + $0x8] sm:$0xf] }
 0x341   : > { %v882_v7 = vld [vmem:[#allocation2 + $0x8] sm:$0xf] }
 0x342   : > { %831 = vrot.lane.b32.xlu0 %v809_v8, %s1280_s17  ;;  %v956_v14 = vld [vmem:[#allocation2 + $0x8] sm:$0xf] }
 0x343   : > { %719 = vrot.lane.b32.xlu1 %v734_v6, %s1281_s18  ;;  %v849_v15 = vld [vmem:[#allocation2 + $0x8] sm:$0xf] }
 0x344   : > { %v922_v16 = vld [vmem:[#allocation2 + $0x8] sm:$0xf] }
 0x345   : > { %v996_v17 = vld [vmem:[#allocation2 + $0x8] sm:$0xf] }
 0x346   : > { %723 = vrot.lane.b32.xlu0 %v701_v10, %s1281_s18 }
 0x347   : > { %900 = vrot.lane.b32.xlu1 %v734_v6, %s1282_s27 }
 0x34a   : > { %797 = vrot.lane.b32.xlu0 %v775_v12, %s1283_s19 }
 0x34b   : > { %867 = vrot.lane.b32.xlu1 %v734_v6, %s1276_s11 }
 0x34e   : > { %904 = vrot.lane.b32.xlu0 %v882_v7, %s1282_s27 }
 0x34f   : > { %1014 = vrot.lane.b32.xlu1 %v734_v6, %s1284_s20 }
 0x352   : > { %978 = vrot.lane.b32.xlu0 %v956_v14, %s1285_s24  ;;  %v894_v14 = vrot.slane %v886_v3, %v1358_v11 }
 0x353   : > { %755 = vrot.lane.b32.xlu1 %v752_v13, %s1279_s16 }
 0x354   : > { %vm1650_vm12 = vcmp.eq.s32.totalorder %v894_v14, 1 }
 0x356   : > { %871 = vrot.lane.b32.xlu0 %v849_v15, %s1276_s11  ;;  %v960_v15 = vsel %vm959_vm4, 1, %v1269_v1 }
 0x357   : > { %829 = vrot.lane.b32.xlu1 %v752_v13, %s1280_s17  ;;  %v964_v27 = vrot.slane %v960_v15, %v1354_v9  ;;  %v968_v29 = vrot.slane %v960_v15, %v1358_v11 }
 0x359   : > { %vm1667_vm4 = vcmp.eq.s32.totalorder %v964_v27, 1 }
 0x35a   : > { %944 = vrot.lane.b32.xlu0 %v922_v16, %s1286_s25 }
 0x35b   : > { %721 = vrot.lane.b32.xlu1 %v752_v13, %s1281_s18 }
 0x35e   : > { %827 = vrot.lane.b32.xlu0 %v734_v6, %s1280_s17 }
 0x35f   : > { %795 = vrot.lane.b32.xlu1 %v752_v13, %s1283_s19 }
 0x362   : > { %793 = vrot.lane.b32.xlu0 %v734_v6, %s1283_s19 }
 0x363   : > { %902 = vrot.lane.b32.xlu1 %v752_v13, %s1282_s27 }
 0x366   : > { %974 = vrot.lane.b32.xlu0 %v734_v6, %s1285_s24 }
 0x367   : > { %976 = vrot.lane.b32.xlu1 %v752_v13, %s1285_s24 }
 0x36a   : > { %940 = vrot.lane.b32.xlu0 %v734_v6, %s1286_s25 }
 0x36b   : > { %869 = vrot.lane.b32.xlu1 %v752_v13, %s1276_s11  ;;  %s251_s11 = scalar_lea.vmem %s1735_s6, %s1221_s23 }
 0x36e   : > { %1016 = vrot.lane.b32.xlu0 %v752_v13, %s1284_s20 }
 0x36f   : > { %942 = vrot.lane.b32.xlu1 %v752_v13, %s1286_s25  ;;  %v890_v13 = vrot.slane %v886_v3, %v1354_v9 }
 0x372   : > { %1049 = vperm.xlu0 %1251, %v1046_v18  }
 0x373   : > { %1018 = vrot.lane.b32.xlu1 %v996_v17, %s1284_s20 }
 0x3b0   : > { %v758_v19 = vpop.permute.xlu0 %757 }
 0x3b1   : > { %v754_v43 = vpop.permute.xlu1 %753 }
 0x3b4   : > { %v832_v20 = vpop.permute.xlu0 %831 }
 0x3b5   : > { %v720_v21 = vpop.permute.xlu1 %719 }
 0x3b8   : > { %v724_v23 = vpop.permute.xlu0 %723 }
 0x3b9   : > { %v1549_v24 = vpop.permute.xlu1 %900 }
 0x3bc   : > { %v1554_v26 = vpop.permute.xlu0 %797 }
 0x3bd   : > { %v1556_v0 = vpop.permute.xlu1 %867 }
 0x3c0   : > { %v1562_v31 = vpop.permute.xlu0 %904 }
 0x3c1   : > { %v1567_v38 = vpop.permute.xlu1 %1014 }
 0x3c4   : > { %v1573_v41 = vpop.permute.xlu0 %978 }
 0x3c5   : > { %v756_v42 = vpop.permute.xlu1 %755 }
 0x3c6   : > { %v760_v46 = vsel %vm759_vm9, %v754_v43, %v756_v42  ;;  %v761_v47 = vsel %vm759_vm9, %v756_v42, %v758_v19  ;;  %vm799_vm9 = vcmask 891904   ;;  %v1216_v19 = vld [vmem:[%s1730_s1 + $0x21] ss:$8 sm:$0x3] }
 0x3c7   : > { %v764_v48 = vsel %vm748_vm3, %v760_v46, 0.0  ;;  %v765_v49 = vsel %vm749_vm7, %v761_v47, 0.0  ;;  %vm852_vm3 = vcmp.ne.s32.totalorder %v1212_v36, 0  ;;  %vm1619_vm7 = vcmp.eq.s32.totalorder %v787_v30, 1 }
 0x3c8   : > { %v768_v51 = vrot.slane %v764_v48, 4  ;;  %v769_v52 = vrot.slane %v765_v49, 4  ;;  %v1583_v28 = vpop.permute.xlu0 %871 }
 0x3c9   : > { %v830_v55 = vpop.permute.xlu1 %829 }
 0x3ca   : > { %772 = vst [vmem:[#allocation3] sm:$0xf0] %v768_v51  ;;  %773 = vst [vmem:[#allocation3 + $0x8] sm:$0xf0] %v769_v52  ;;  %v835_v56 = vsel %vm833_vm8, %v830_v55, %v832_v20 }
 0x3cb   : > { %v839_v59 = vsel %vm1576_vm11, %v835_v56, 0.0  ;;  %vm906_vm11 = vcmask 760832  }
 0x3cc   : > { %v843_v60 = vrot.slane %v839_v59, 4  ;;  %v1595_v61 = vpop.permute.xlu0 %944 }
 0x3cd   : > { %v722_v44 = vpop.permute.xlu1 %721 }
 0x3ce   : > { %847 = vst [vmem:[#allocation3 + $0x18] sm:$0xf0] %v843_v60  ;;  %v726_v4 = vsel %vm725_vm13, %v720_v21, %v722_v44  ;;  %v727_v5 = vsel %vm725_vm13, %v722_v44, %v724_v23  ;;  %v853_v21 = vsel %vm852_vm3, 1, %v1269_v1  ;;  %vm980_vm13 = vcmask 637952  }
 0x3cf   : > { %v730_v8 = vsel %vm1597_vm14, %v726_v4, 0.0  ;;  %v731_v10 = vsel %vm1601_vm0, %v727_v5, 0.0  ;;  %v857_v40 = vrot.slane %v853_v21, %v1354_v9  ;;  %vm999_vm14 = vcmp.ne.s32.totalorder %v1216_v19, 0 }
 0x3d0   : > { %732 = vst [vmem:[#allocation3] sm:$0xf] %v730_v8  ;;  %733 = vst [vmem:[#allocation3 + $0x8] sm:$0xf] %v731_v10  ;;  %v828_v12 = vpop.permute.xlu0 %827  ;;  %vm925_vm0 = vcmp.ne.s32.totalorder %v1214_v22, 0  ;;  %v861_v47 = vrot.slane %v853_v21, %v1358_v11  ;;  %v1000_v52 = vsel %vm999_vm14, 1, %v1269_v1 }
 0x3d1   : > { %v834_v16 = vsel %vm833_vm8, %v828_v12, %v830_v55  ;;  %v796_v17 = vpop.permute.xlu1 %795  ;;  %vm1646_vm8 = vcmp.eq.s32.totalorder %v890_v13, 1  ;;  %v926_v53 = vsel %vm925_vm0, 1, %v1269_v1  ;;  %v1004_v62 = vrot.slane %v1000_v52, %v1354_v9 }
 0x3d2   : > { %v838_v43 = vsel %vm1611_vm6, %v834_v16, 0.0  ;;  %v801_v20 = vsel %vm799_vm9, %v796_v17, %v1554_v26  ;;  %vm1671_vm6 = vcmp.eq.s32.totalorder %v968_v29, 1  ;;  %vm1684_vm3 = vcmp.eq.s32.totalorder %v861_v47, 1  ;;  %v1045_v26 = vld [vmem:[%s1733_s4] sm:$0x3] }
 0x3d3   : > { %v842_v23 = vrot.slane %v838_v43, 4  ;;  %v805_v25 = vsel %vm1619_vm7, %v801_v20, 0.0  ;;  %v934_v2 = vrot.slane %v926_v53, %v1358_v11  ;;  %vm1020_vm7 = vcmask 629760  }
 0x3d4   : > { %807 = vst [vmem:[#allocation3 + $0x18] sm:$0xf] %v805_v25  ;;  %v794_v32 = vpop.permute.xlu0 %793 }
 0x3d5   : > { %846 = vst [vmem:[#allocation3 + $0x10] sm:$0xf0] %v842_v23  ;;  %v800_v37 = vsel %vm799_vm9, %v794_v32, %v796_v17  ;;  %v903_v39 = vpop.permute.xlu1 %902  ;;  %vm1680_vm9 = vcmp.eq.s32.totalorder %v857_v40, 1 }
 0x3d6   : > { %v804_v42 = vsel %vm1627_vm10, %v800_v37, 0.0  ;;  %v907_v45 = vsel %vm906_vm11, %v1549_v24, %v903_v39  ;;  %v908_v46 = vsel %vm906_vm11, %v903_v39, %v1562_v31  ;;  %vm946_vm10 = vcmask 646144  }
 0x3d7   : > { %806 = vst [vmem:[#allocation3 + $0x10] sm:$0xf] %v804_v42  ;;  %v911_v48 = vsel %vm1646_vm8, %v907_v45, 0.0  ;;  %v912_v49 = vsel %vm1650_vm12, %v908_v46, 0.0  ;;  %v1030_v59 = vld [vmem:[#allocation3 + $0x8] sm:$0xff]  ;;  %v1029_v6 = vld [vmem:[#allocation3] sm:$0xff] }
 0x3d8   : > { %v915_v24 = vrot.slane %v911_v48, 4  ;;  %v916_v51 = vrot.slane %v912_v49, 4  ;;  %v975_v31 = vpop.permute.xlu0 %974  ;;  %vm1009_vm11 = vcmp.eq.s32.totalorder %v1004_v62, 1  ;;  %vm936_vm12 = vcmp.eq.s32.totalorder %v934_v2, 1 }
 0x3d9   : > { %v977_v54 = vpop.permute.xlu1 %976 }
 0x3da   : > { %919 = vst [vmem:[#allocation3 + $0x20] sm:$0xf0] %v915_v24  ;;  %920 = vst [vmem:[#allocation3 + $0x28] sm:$0xf0] %v916_v51  ;;  %v981_v55 = vsel %vm980_vm13, %v975_v31, %v977_v54  ;;  %v982_v33 = vsel %vm980_vm13, %v977_v54, %v1573_v41  ;;  %v930_v41 = vrot.slane %v926_v53, %v1354_v9 }
 0x3db   : > { %v985_v58 = vsel %vm1667_vm4, %v981_v55, 0.0  ;;  %v986_v1 = vsel %vm1671_vm6, %v982_v33, 0.0  ;;  %v1032_v60 = vld [vmem:[#allocation3 + $0x18] sm:$0xff] }
 0x3dc   : > { %v989_v63 = vrot.slane %v985_v58, 4  ;;  %v990_v30 = vrot.slane %v986_v1, 4  ;;  %v941_v36 = vpop.permute.xlu0 %940  ;;  %v1040_v44 = vpack.c.bf16 %v1032_v60, %v1030_v59  ;;  %vm935_vm8 = vcmp.eq.s32.totalorder %v930_v41, 1  ;;  %v1259_v59 = vld [vmem:[%s1343_s26] sm:$0xff] }
 0x3dd   : > { %v870_v3 = vpop.permute.xlu1 %869  ;;  %v1125_v60 = vcombine.high %v1259_v59, %v1259_v59 }
 0x3de   : > { %993 = vst [vmem:[#allocation3 + $0x30] sm:$0xf0] %v989_v63  ;;  %994 = vst [vmem:[#allocation3 + $0x38] sm:$0xf0] %v990_v30  ;;  %v873_v4 = vsel %vm431_vm2, %v1556_v0, %v870_v3  ;;  %v874_v5 = vsel %vm431_vm2, %v870_v3, %v1583_v28  ;;  %1061 = vmatprep.subr.bf16.mxu1 %v1040_v44  ;;  %v1031_v8 = vld [vmem:[#allocation3 + $0x10] sm:$0xff]  ;;  %v1008_v0 = vrot.slane %v1000_v52, %v1358_v11 }
 0x3df   : > { %v877_v9 = vsel %vm1680_vm9, %v873_v4, 0.0  ;;  %v878_v10 = vsel %vm1684_vm3, %v874_v5, 0.0  ;;  %v1039_v12 = vpack.c.bf16 %v1031_v8, %v1029_v6 }
 0x3e0   : > { %879 = vst [vmem:[#allocation3 + $0x20] sm:$0xf] %v877_v9  ;;  %880 = vst [vmem:[#allocation3 + $0x28] sm:$0xf] %v878_v10  ;;  %v1017_v7 = vpop.permute.xlu0 %1016  ;;  %vm1010_vm2 = vcmp.eq.s32.totalorder %v1008_v0, 1 }
 0x3e1   : > { %v1021_v28 = vsel %vm1020_vm7, %v1567_v38, %v1017_v7  ;;  %1062 = vmatpush1.bf16.msra.mxu1 %v1039_v12  ;;  %v943_v13 = vpop.permute.xlu1 %942 }
 0x3e2   : > { %v1025_v14 = vsel %vm1009_vm11, %v1021_v28, 0.0  ;;  %v947_v15 = vsel %vm946_vm10, %v941_v36, %v943_v13  ;;  %v948_v16 = vsel %vm946_vm10, %v943_v13, %v1595_v61 }
 0x3e3   : > { %1027 = vst [vmem:[#allocation3 + $0x40] sm:$0xf] %v1025_v14  ;;  %v951_v17 = vsel %vm935_vm8, %v947_v15, 0.0  ;;  %v952_v18 = vsel %vm936_vm12, %v948_v16, 0.0 }
 0x3e4   : > { %953 = vst [vmem:[#allocation3 + $0x30] sm:$0xf] %v951_v17  ;;  %954 = vst [vmem:[#allocation3 + $0x38] sm:$0xf] %v952_v18 }
 0x3e5   : > { %v1019_v19 = vpop.permute.xlu1 %1018 }
 0x3e6   : > { %v1022_v11 = vsel %vm1020_vm7, %v1017_v7, %v1019_v19 }
 0x3e7   : > { %v1026_v43 = vsel %vm1010_vm2, %v1022_v11, 0.0  ;;  %v1034_v38 = vld [vmem:[#allocation3 + $0x28] sm:$0xff]  ;;  %v1033_v20 = vld [vmem:[#allocation3 + $0x20] sm:$0xff] }
 0x3e8   : > { %1028 = vst [vmem:[#allocation3 + $0x48] sm:$0xf] %v1026_v43 }
 0x3ea   : > { %v1037_v23 = vld [vmem:[#allocation3 + $0x40] sm:$0xf] }
 0x3eb   : > { %v1036_v21 = vld [vmem:[#allocation3 + $0x38] sm:$0xff]  ;;  %v1035_v22 = vld [vmem:[#allocation3 + $0x30] sm:$0xff]  ;;  %v1043_v61 = vpack.c.bf16 %v1037_v23, %v1037_v23 }
 0x3ec   : > { %v1042_v25 = vpack.c.bf16 %v1036_v21, %v1034_v38  ;;  %v1041_v27 = vpack.c.bf16 %v1035_v22, %v1033_v20 }
 0x3ed   : > { %v1056_v35 = vsel %vm615_vm15, %v1043_v61, 0 }
 0x3ee   : > { %1063 = vmatprep.subr.bf16.mxu1 %v1042_v25 }
 0x3ef   : > { %1064 = vmatpush1.bf16.msra.mxu1 %v1041_v27  ;;  %v1038_v29 = vld [vmem:[#allocation3 + $0x48] sm:$0xf] }
 0x3f0   : > { %v1044_v32 = vpack.c.bf16 %v1038_v29, %v1038_v29 }
 0x3f1   : > { %v1050_v37 = vpop.permute.xlu0 %1049 }
 0x3f2   : > { %1217 = vmatprep.subr.msk.bf16.mxu1 %vm615_vm15, %v1044_v32 }
 0x3f3   : > { %1066 = vmatpush1.bf16.msra.mxu1 %v1056_v35 }
 0x3f6   : > { %1218 = vmatmul.mubr.msk.bf16.vlgmr.msra.gmra.mrb[0].mxu1 %vm611_vm1, %v1045_v26 }
 0x4c9   : > { %v1095_v39 = vpop.f32.mrb[0].mxu1 }
 0x4ca   : > { %v1096_v40 = vadd.f32 %v1095_v39, %v1050_v37  ;;  %v1097_v42 = vpop.f32.mrb[1].mxu1 }
 0x4cb   : > { %v1098_v45 = vadd.f32 %v1097_v42, %v1050_v37  ;;  %v1099_v46 = vpop.f32.mrb[2].mxu1 }
 0x4cc   : > { %v1100_v47 = vpop.f32.mrb[3].mxu1  ;;  %v1102_v48 = vsel %vm663_vm5, %v1096_v40, 0.0  ;;  %v1108_v49 = vmul.f32 %v1096_v40, %v1096_v40 }
 0x4cd   : > { %v1103_v50 = vsel %vm663_vm5, %v1098_v45, 0.0  ;;  %v1109_v34 = vmul.f32 %v1098_v45, %v1098_v45 }
 0x4ce   : > { %v1104_v24 = vadd.f32 %v1103_v50, %v1102_v48  ;;  %v1110_v51 = vsel %vm663_vm5, %v1108_v49, 0.0 }
 0x4cf   : > { %v1111_v31 = vsel %vm663_vm5, %v1109_v34, 0.0 }
 0x4d0   : > { %1105 = vadd.xlane.f32.xlu1 %v1104_v24  ;;  %v1112_v52 = vadd.f32 %v1111_v31, %v1110_v51 }
 0x4d2   : > { %1113 = vadd.xlane.f32.xlu0 %v1112_v52 }
 0x55d   : > { %v1106_v53 = vpop.xlane.xlu1 %1105 }
 0x55e   : > { %v1107_v54 = vmul.f32 0.00390625, %v1106_v53 }
 0x55f   : > { %v1114_v55 = vpop.xlane.xlu0 %1113 }
 0x560   : > { %v1115_v33 = vmul.f32 0.00390625, %v1114_v55  ;;  %v1116_v56 = vmul.f32 %v1107_v54, %v1107_v54  ;;  %v1119_v62 = vsub.f32 %v1096_v40, %v1107_v54  ;;  %v1120_v41 = vsub.f32 %v1098_v45, %v1107_v54 }
 0x562   : > { %v1117_v57 = vsub.f32 %v1115_v33, %v1116_v56 }
 0x564   : > { %v1118_v58 = vmax.f32 %v1117_v57, 0.0 }
 0x566   : > { %v1121_v1 = vadd.f32 1e-05, %v1118_v58 }
 0x568   : > { %1257 = vrsqrt.f32 %v1121_v1 }
 0x572   : > { %v1258_v63 = vpop.eup %1257 }
 0x573   : > { %v1123_v30 = vmul.f32 %v1258_v63, %v1119_v62  ;;  %v1124_v36 = vmul.f32 %v1258_v63, %v1120_v41 }
 0x575   : > { %v1127_v44 = vadd.f32 %v1259_v59, %v1123_v30  ;;  %v1128_v2 = vadd.f32 %v1125_v60, %v1124_v36 }
 0x577   : > { %v1131_v3 = vcombine.low %v1127_v44, %v1128_v2 }
 0x579   : > { %1133 = vst [vmem:[%s251_s11] sm:$0xff] %v1131_v3 }
 0x57a PF: > { %s16_s21 = sadd.s32 1, %s1266_s21  }
 0x57b   : > { %p13_p4 = scmp.ge.s32.totalorder %s16_s21, 4  }
 0x57d   :  { %15 = sbr.rel (!%p13_p4) target bundleno = 1 (0x1), region = 91 }

</bundles_post_ra>
